<compile_context>
chip_gen: v6e
topology: v6e:2x2x1
jax: 0.10.0
libtpu: 0.0.40
codegen_flags: <defaults>
</compile_context>

<pallas_src>
import random

import jax
import jax.numpy as jnp
from jax.experimental import pallas as pl
from jax.experimental.pallas import tpu as pltpu


# --------------------------------------------------------------------------
# Fused decoder kernel
# --------------------------------------------------------------------------
def _make_decoder_kernel(B, Np, Dout, H, K, L, activation, mm_dtype):
    """Build the fused DCRNN-decoder kernel (all config static).

    Ref signature (after the scalar-prefetch arg):
      use_tf_ref : (T,) int32 SMEM       per-step teacher-forcing flag
      sb_ref     : (B, Np, Np) mm_dtype  support, pre-broadcast over batch
      x_ref      : (1, B*Np, Dout)       teacher input block
      h0_hbm     : (L, B*Np, H) ANY/HBM  encoder hidden state (copied once)
      w0x/w0hru/w0hc/b0 : layer-0 cell weights   (output-stacked, bf16)
      w1x/w1hru/w1hc/b1 : shared-cell weights    (layers >= 1)
      wp/bp      : projection weight / bias
      out_ref    : (1, B*Np, Dout)       projected output for step t
      hid_scr    : (L, B*Np, H) VMEM     hidden state carried across steps
      cur_scr    : (B*Np, Dout) VMEM     fed-back projection across steps
      dma_sem    : DMA semaphore for the one-time h0 copy
    """

    def kernel(use_tf_ref, sb_ref, x_ref, h0_hbm,
               w0x_ref, w0hru_ref, w0hc_ref, b0_ref,
               w1x_ref, w1hru_ref, w1hc_ref, b1_ref,
               wp_ref, bp_ref,
               out_ref, hid_scr, cur_scr, dma_sem):
        t = pl.program_id(0)

        @pl.when(t == 0)
        def _init():
            # one-time HBM -> VMEM copy of the encoder hidden state
            cp = pltpu.make_async_copy(h0_hbm, hid_scr, dma_sem.at[0])
            cp.start()
            cp.wait()
            cur_scr[...] = jnp.zeros_like(cur_scr)          # go symbol

        Sb = sb_ref[...]                                    # (B, Np, Np)

        def s_apply(f2):
            # ONE batched MXU contraction: (B,Np,Np) @ (B,Np,F) -> (B,Np,F)
            F = f2.shape[-1]
            f3 = f2.reshape(B, Np, F).astype(mm_dtype)
            y = jax.lax.dot_general(
                Sb, f3,
                dimension_numbers=(((2,), (1,)), ((0,), (0,))),
                preferred_element_type=jnp.float32)
            return y.reshape(B * Np, F)

        def cheb_apply(f2, w_ref):
            # acc += T_k(S) f @ W_k, accumulated as each T_k is produced
            # (no lane-axis concatenation of propagated features).
            acc = jnp.dot(f2.astype(mm_dtype), w_ref[0],
                          preferred_element_type=jnp.float32)
            if K >= 1:
                t1 = s_apply(f2)
                acc = acc + jnp.dot(t1.astype(mm_dtype), w_ref[1],
                                    preferred_element_type=jnp.float32)
                tkm2, tkm1 = f2, t1
                for k in range(2, K + 1):
                    tk = 2.0 * s_apply(tkm1) - tkm2
                    acc = acc + jnp.dot(tk.astype(mm_dtype), w_ref[k],
                                        preferred_element_type=jnp.float32)
                    tkm2, tkm1 = tkm1, tk
            return acc

        def act(c):
            if activation == "tanh":
                return jnp.tanh(c)
            if activation == "relu":
                return jnp.maximum(c, 0.0)
            return c

        def dcgru_cell(x2, h2, wx_ref, whru_ref, whc_ref, b_ref):
            # x-side conv gives [r|u|c] (3H lanes), h-side conv gives [r|u].
            gx = cheb_apply(x2, wx_ref) + b_ref[...]        # (R, 3H)
            gh = cheb_apply(h2, whru_ref)                   # (R, 2H)
            r = jax.nn.sigmoid(gx[:, :H] + gh[:, :H])
            u = jax.nn.sigmoid(gx[:, H:2 * H] + gh[:, H:])
            c = act(gx[:, 2 * H:] + cheb_apply(r * h2, whc_ref))
            return u * h2 + (1.0 - u) * c                   # f32 state math

        # layer 0 (own weights), then layers 1..L-1 (shared cell weights,
        # each with its own hidden state) -- mirrors the torch ModuleList.
        cur = dcgru_cell(cur_scr[...], hid_scr[0],
                         w0x_ref, w0hru_ref, w0hc_ref, b0_ref)
        hid_scr[0] = cur
        for l in range(1, L):
            cur = dcgru_cell(cur, hid_scr[l],
                             w1x_ref, w1hru_ref, w1hc_ref, b1_ref)
            hid_scr[l] = cur

        # dropout(p=0.0) is identity; projection fused into this kernel.
        proj = (jnp.dot(cur.astype(mm_dtype), wp_ref[...],
                        preferred_element_type=jnp.float32) + bp_ref[...])
        out_ref[0] = proj

        # autoregressive feedback or teacher input (host-decided flag).
        tf = (use_tf_ref[t] > 0).astype(jnp.float32)
        cur_scr[...] = tf * x_ref[0] + (1.0 - tf) * proj

    return kernel


# --------------------------------------------------------------------------
# Host-side weight prep (torch DiffusionGraphConv layout -> kernel layout)
# --------------------------------------------------------------------------
def _prep_cell_params(p, H, mm_dtype):
    """Split by source and stack gate outputs along the output axis.

    returns:
      wx   : (M, din, 3H)  columns [r | u | c]   (applied to T_k(x))
      whru : (M, H, 2H)    columns [r | u]       (applied to T_k(h))
      whc  : (M, H, H)                            (applied to T_k(r*h))
      bias : (1, 3H)       [br | bu | bc]
    """
    wx = jnp.concatenate([p["wgx"][:, :, :H], p["wgx"][:, :, H:], p["wcx"]],
                         axis=2)
    whru = p["wgh"]
    whc = p["wch"]
    bias = jnp.concatenate([p["bg"][:, :H], p["bg"][:, H:], p["bc"]], axis=1)
    return (wx.astype(mm_dtype), whru.astype(mm_dtype),
            whc.astype(mm_dtype), bias.astype(jnp.float32))


# --------------------------------------------------------------------------
# Decoder forward: ONE pallas_call over the whole sequence
# --------------------------------------------------------------------------
def dcrnn_decoder_forward(inputs, initial_hidden_state, supports,
                          cell_params, proj_w, proj_b,
                          hid_dim, output_dim, max_diffusion_step,
                          activation="tanh", teacher_forcing_ratio=None,
                          matmul_dtype=jnp.bfloat16):
    """
    inputs:               (seq_len, batch, num_nodes, output_dim)
    initial_hidden_state: (num_layers, batch, num_nodes * hid_dim)
    supports:             list of (num_nodes, num_nodes) diffusion matrices
    returns:              (seq_len, batch, num_nodes * output_dim)
    """
    T, B, N, Dout = inputs.shape
    L = initial_hidden_state.shape[0]
    H = hid_dim
    K = max_diffusion_step
    M = K + 1
    S = supports[0].astype(jnp.float32)

    # Pad node axis to a sublane multiple so in-kernel (B*Np,F)<->(B,Np,F)
    # reshapes are tile-aligned. Zero rows/cols of S keep the padding inert.
    Np = ((N + 7) // 8) * 8
    pad = Np - N
    h0 = initial_hidden_state.reshape(L, B, N, H)
    if pad:
        S = jnp.pad(S, ((0, pad), (0, pad)))
        inputs = jnp.pad(inputs, ((0, 0), (0, 0), (0, pad), (0, 0)))
        h0 = jnp.pad(h0, ((0, 0), (0, 0), (0, pad), (0, 0)))
    BN = B * Np

    Sb = jnp.tile(S[None].astype(matmul_dtype), (B, 1, 1))      # (B, Np, Np)
    x_seq = inputs.reshape(T, BN, Dout).astype(jnp.float32)
    h0 = h0.reshape(L, BN, H).astype(jnp.float32)

    w0x, w0hru, w0hc, b0 = _prep_cell_params(cell_params[0], H, matmul_dtype)
    w1x, w1hru, w1hc, b1 = _prep_cell_params(cell_params[1], H, matmul_dtype)
    wp = proj_w.astype(matmul_dtype)
    bp = proj_b.astype(jnp.float32)

    if teacher_forcing_ratio is None:
        use_tf = jnp.zeros((T,), jnp.int32)
        x_map = lambda t, tf: (0, 0, 0)        # never used -> single DMA
    else:
        # host-side randomness (same semantics as torch's random.random()),
        # materialized once per call and passed as data via scalar prefetch.
        use_tf = jnp.asarray(
            [1 if random.random() < teacher_forcing_ratio else 0
             for _ in range(T)], dtype=jnp.int32)
        x_map = lambda t, tf: (t, 0, 0)

    kernel = _make_decoder_kernel(B, Np, Dout, H, K, L, activation,
                                  matmul_dtype)

    c3 = lambda t, tf: (0, 0, 0)
    c2 = lambda t, tf: (0, 0)

    grid_spec = pltpu.PrefetchScalarGridSpec(
        num_scalar_prefetch=1,
        grid=(T,),
        in_specs=[
            pl.BlockSpec((B, Np, Np), c3),                   # support (bcast)
            pl.BlockSpec((1, BN, Dout), x_map),              # teacher x
            pl.BlockSpec(memory_space=pl.ANY),               # h0 (HBM, 1 DMA)
            pl.BlockSpec((M, Dout, 3 * H), c3),              # cell0 Wx [r|u|c]
            pl.BlockSpec((M, H, 2 * H), c3),                 # cell0 Wh [r|u]
            pl.BlockSpec((M, H, H), c3),                     # cell0 Wh  c
            pl.BlockSpec((1, 3 * H), c2),                    # cell0 bias
            pl.BlockSpec((M, H, 3 * H), c3),                 # shared Wx
            pl.BlockSpec((M, H, 2 * H), c3),                 # shared Wh ru
            pl.BlockSpec((M, H, H), c3),                     # shared Wh c
            pl.BlockSpec((1, 3 * H), c2),                    # shared bias
            pl.BlockSpec((H, Dout), c2),                     # proj W
            pl.BlockSpec((1, Dout), c2),                     # proj b
        ],
        out_specs=pl.BlockSpec((1, BN, Dout), lambda t, tf: (t, 0, 0)),
        scratch_shapes=[
            pltpu.VMEM((L, BN, H), jnp.float32),   # hidden states (carried)
            pltpu.VMEM((BN, Dout), jnp.float32),   # fed-back projection
            pltpu.SemaphoreType.DMA((1,)),         # h0 copy semaphore
        ],
    )

    out = pl.pallas_call(
        kernel,
        out_shape=jax.ShapeDtypeStruct((T, BN, Dout), jnp.float32),
        grid_spec=grid_spec,
        compiler_params=pltpu.CompilerParams(
            dimension_semantics=("arbitrary",),
            vmem_limit_bytes=64 * 1024 * 1024),
    )(use_tf, Sb, x_seq, h0, w0x, w0hru, w0hc, b0,
      w1x, w1hru, w1hc, b1, wp, bp)

    out = out.reshape(T, B, Np, Dout)[:, :, :N, :]
    return out.reshape(T, B, N * Dout)


# --------------------------------------------------------------------------
# Pure-JAX reference (original weight layout) for the correctness check
# --------------------------------------------------------------------------
def _ref_diff_conv(S, feat, w, K):
    acc = feat @ w[0]
    if K >= 1:
        t2, t1 = feat, S @ feat
        acc = acc + t1 @ w[1]
        for k in range(2, K + 1):
            tk = 2.0 * (S @ t1) - t2
            acc = acc + tk @ w[k]
            t1, t2 = tk, t1
    return acc


def _ref_cell(S, x, h, p, K, H, activation):
    def one(xb, hb):
        g = jax.nn.sigmoid(_ref_diff_conv(S, xb, p["wgx"], K)
                           + _ref_diff_conv(S, hb, p["wgh"], K) + p["bg"])
        r, u = g[:, :H], g[:, H:]
        c = (_ref_diff_conv(S, xb, p["wcx"], K)
             + _ref_diff_conv(S, r * hb, p["wch"], K) + p["bc"])
        if activation == "tanh":
            c = jnp.tanh(c)
        elif activation == "relu":
            c = jnp.maximum(c, 0.0)
        return u * hb + (1.0 - u) * c
    return jax.vmap(one)(x, h)


def _ref_decoder(inputs, init_hidden, supports, cell_params, wp, bp,
                 H, Dout, K, activation, use_teacher=None):
    T, B, N, _ = inputs.shape
    L = init_hidden.shape[0]
    S = supports[0]
    hidden = [init_hidden[l].reshape(B, N, H) for l in range(L)]
    cur = jnp.zeros((B, N, Dout), jnp.float32)
    outs = []
    for t in range(T):
        for l in range(L):
            p = cell_params[0] if l == 0 else cell_params[1]
            hnew = _ref_cell(S, cur, hidden[l], p, K, H, activation)
            cur = hnew
            hidden[l] = hnew
        proj = jnp.einsum("bnh,ho->bno", cur, wp) + bp
        outs.append(proj.reshape(B, N * Dout))
        if use_teacher is not None and use_teacher[t]:
            cur = inputs[t]
        else:
            cur = proj
    return jnp.stack(outs, 0)


# --------------------------------------------------------------------------
if __name__ == "__main__":
    SEQ, B, N = 8, 2, 16
    OUT_DIM = 2                 # decoder feeds its own projection back in
    HID = 32
    K = 2                       # max_diffusion_step
    L = 2                       # num_rnn_layers
    M = K + 1                   # single 'laplacian' support
    ACT = "tanh"

    random.seed(0)
    key = jax.random.PRNGKey(0)
    ks = jax.random.split(key, 8)

    def init_cell(kbase, din):
        kk = jax.random.split(kbase, 4)
        s = 0.1
        return dict(
            wgx=jax.random.normal(kk[0], (M, din, 2 * HID), jnp.float32) * s,
            wgh=jax.random.normal(kk[1], (M, HID, 2 * HID), jnp.float32) * s,
            bg=jnp.full((1, 2 * HID), 1.0, jnp.float32),
            wcx=jax.random.normal(kk[2], (M, din, HID), jnp.float32) * s,
            wch=jax.random.normal(kk[3], (M, HID, HID), jnp.float32) * s,
            bc=jnp.zeros((1, HID), jnp.float32),
        )

    cell_params = [init_cell(ks[0], OUT_DIM),   # first decoding cell
                   init_cell(ks[1], HID)]       # shared cell, layers 1..L-1
    wp = jax.random.normal(ks[2], (HID, OUT_DIM), jnp.float32) * 0.1
    bp = jax.random.normal(ks[3], (1, OUT_DIM), jnp.float32) * 0.1

    # deterministic scaled-laplacian-like support (supports are module inputs)
    A = jnp.abs(jax.random.normal(ks[4], (N, N), jnp.float32))
    A = 0.5 * (A + A.T)
    d_inv_sqrt = 1.0 / jnp.sqrt(jnp.sum(A, axis=1))
    An = A * d_inv_sqrt[:, None] * d_inv_sqrt[None, :]
    support = -An
    supports = [support.astype(jnp.float32)]

    inputs = jax.random.normal(ks[5], (SEQ, B, N, OUT_DIM), jnp.float32)
    init_hidden = jax.random.normal(ks[6], (L, B, N * HID), jnp.float32) * 0.1

    # --- f32 matmul path, autoregressive: tight logic check ---------------
    out_f32 = dcrnn_decoder_forward(
        inputs, init_hidden, supports, cell_params, wp, bp,
        hid_dim=HID, output_dim=OUT_DIM, max_diffusion_step=K,
        activation=ACT, teacher_forcing_ratio=None,
        matmul_dtype=jnp.float32)
    out_f32 = jax.block_until_ready(out_f32)
    assert out_f32.shape == (SEQ, B, N * OUT_DIM)
    ref = _ref_decoder(inputs, init_hidden, supports, cell_params, wp, bp,
                       HID, OUT_DIM, K, ACT, use_teacher=None)
    assert jnp.max(jnp.abs(out_f32 - ref)) < 2e-3, "f32 mismatch vs reference"

    # --- f32 path, teacher forcing ratio 1.0 (deterministic) --------------
    out_tf = dcrnn_decoder_forward(
        inputs, init_hidden, supports, cell_params, wp, bp,
        hid_dim=HID, output_dim=OUT_DIM, max_diffusion_step=K,
        activation=ACT, teacher_forcing_ratio=1.0,
        matmul_dtype=jnp.float32)
    out_tf = jax.block_until_ready(out_tf)
    ref_tf = _ref_decoder(inputs, init_hidden, supports, cell_params, wp, bp,
                          HID, OUT_DIM, K, ACT, use_teacher=[True] * SEQ)
    assert jnp.max(jnp.abs(out_tf - ref_tf)) < 2e-3, "TF path mismatch"

    # --- bf16 MXU-operand fast path (default): loose numeric check --------
    out_bf16 = dcrnn_decoder_forward(
        inputs, init_hidden, supports, cell_params, wp, bp,
        hid_dim=HID, output_dim=OUT_DIM, max_diffusion_step=K,
        activation=ACT, teacher_forcing_ratio=None,
        matmul_dtype=jnp.bfloat16)
    out_bf16 = jax.block_until_ready(out_bf16)
    assert out_bf16.shape == (SEQ, B, N * OUT_DIM)
    assert jnp.max(jnp.abs(out_bf16 - ref)) < 1e-1, "bf16 path diverged"

    print("KERNEL_OK")
</pallas_src>

<mosaic_0001>
module attributes {stable_mosaic.version = 11 : i64} {
  func.func @kernel(%arg0: i32, %arg1: memref<8xi32, #tpu.memory_space<smem>>, %arg2: memref<2x16x16xf32, #tpu.memory_space<vmem>>, %arg3: memref<1x32x2xf32, #tpu.memory_space<vmem>>, %arg4: memref<2x32x32xf32, #tpu.memory_space<any>>, %arg5: memref<3x2x96xf32, #tpu.memory_space<vmem>>, %arg6: memref<3x32x64xf32, #tpu.memory_space<vmem>>, %arg7: memref<3x32x32xf32, #tpu.memory_space<vmem>>, %arg8: memref<1x96xf32, #tpu.memory_space<vmem>>, %arg9: memref<3x32x96xf32, #tpu.memory_space<vmem>>, %arg10: memref<3x32x64xf32, #tpu.memory_space<vmem>>, %arg11: memref<3x32x32xf32, #tpu.memory_space<vmem>>, %arg12: memref<1x96xf32, #tpu.memory_space<vmem>>, %arg13: memref<32x2xf32, #tpu.memory_space<vmem>>, %arg14: memref<1x2xf32, #tpu.memory_space<vmem>>, %arg15: memref<1x32x2xf32, #tpu.memory_space<vmem>>, %arg16: memref<2x32x32xf32, #tpu.memory_space<vmem>>, %arg17: memref<32x2xf32, #tpu.memory_space<vmem>>, %arg18: memref<1x!tpu.dma_semaphore, #tpu.memory_space<semaphore_mem>>) attributes {dimension_semantics = [#tpu.dimension_semantics<arbitrary>], iteration_bounds = array<i64: 8>, scalar_prefetch = 1 : i64, scratch_operands = 3 : i64, tpu.core_type = #tpu.core_type<tc>, window_params = [{pipeline_mode = #tpu.pipeline_mode<synchronous>, transform_indices = @transform_0, window_bounds = array<i64: 2, 16, 16>}, {transform_indices = @transform_1, window_bounds = array<i64: 1, 32, 2>}, {}, {pipeline_mode = #tpu.pipeline_mode<synchronous>, transform_indices = @transform_3, window_bounds = array<i64: 3, 2, 96>}, {pipeline_mode = #tpu.pipeline_mode<synchronous>, transform_indices = @transform_4, window_bounds = array<i64: 3, 32, 64>}, {pipeline_mode = #tpu.pipeline_mode<synchronous>, transform_indices = @transform_5, window_bounds = array<i64: 3, 32, 32>}, {pipeline_mode = #tpu.pipeline_mode<synchronous>, transform_indices = @transform_6, window_bounds = array<i64: 1, 96>}, {pipeline_mode = #tpu.pipeline_mode<synchronous>, transform_indices = @transform_7, window_bounds = array<i64: 3, 32, 96>}, {pipeline_mode = #tpu.pipeline_mode<synchronous>, transform_indices = @transform_8, window_bounds = array<i64: 3, 32, 64>}, {pipeline_mode = #tpu.pipeline_mode<synchronous>, transform_indices = @transform_9, window_bounds = array<i64: 3, 32, 32>}, {pipeline_mode = #tpu.pipeline_mode<synchronous>, transform_indices = @transform_10, window_bounds = array<i64: 1, 96>}, {pipeline_mode = #tpu.pipeline_mode<synchronous>, transform_indices = @transform_11, window_bounds = array<i64: 32, 2>}, {pipeline_mode = #tpu.pipeline_mode<synchronous>, transform_indices = @transform_12, window_bounds = array<i64: 1, 2>}, {transform_indices = @transform_13, window_bounds = array<i64: 1, 32, 2>}]} {
    %c0_i32 = arith.constant 0 : i32
    %0 = arith.cmpi eq, %arg0, %c0_i32 : i32
    %1 = arith.extui %0 : i1 to i32
    %c0_i32_0 = arith.constant 0 : i32
    %2 = arith.cmpi ne, %1, %c0_i32_0 : i32
    scf.if %2 {
      %c0_i32_129 = arith.constant 0 : i32
      %213 = tpu.memref_slice %arg18[%c0_i32_129] : memref<1x!tpu.dma_semaphore, #tpu.memory_space<semaphore_mem>> -> memref<1x!tpu.dma_semaphore, #tpu.memory_space<semaphore_mem>>
      %214 = tpu.memref_squeeze %213 : memref<1x!tpu.dma_semaphore, #tpu.memory_space<semaphore_mem>> -> memref<!tpu.dma_semaphore, #tpu.memory_space<semaphore_mem>>
      tpu.enqueue_dma source(%arg4 : memref<2x32x32xf32, #tpu.memory_space<any>>) target(%arg16 : memref<2x32x32xf32, #tpu.memory_space<vmem>>) target_semaphore(%214 : memref<!tpu.dma_semaphore, #tpu.memory_space<semaphore_mem>>)
      %c0_i32_130 = arith.constant 0 : i32
      %215 = tpu.memref_slice %arg18[%c0_i32_130] : memref<1x!tpu.dma_semaphore, #tpu.memory_space<semaphore_mem>> -> memref<1x!tpu.dma_semaphore, #tpu.memory_space<semaphore_mem>>
      %216 = tpu.memref_squeeze %215 : memref<1x!tpu.dma_semaphore, #tpu.memory_space<semaphore_mem>> -> memref<!tpu.dma_semaphore, #tpu.memory_space<semaphore_mem>>
      tpu.wait_dma2 semaphore(%216 : memref<!tpu.dma_semaphore, #tpu.memory_space<semaphore_mem>>) src(%arg4 : memref<2x32x32xf32, #tpu.memory_space<any>>) dst(%arg16 : memref<2x32x32xf32, #tpu.memory_space<vmem>>)
      %cst_131 = arith.constant 0.000000e+00 : f32
      %217 = vector.broadcast %cst_131 : f32 to vector<32x2xf32>
      %c0_132 = arith.constant 0 : index
      %c0_133 = arith.constant 0 : index
      %218 = vector.load %arg17[%c0_132, %c0_133] : memref<32x2xf32, #tpu.memory_space<vmem>>, vector<32x2xf32>
      tpu.vector_store %arg17[%c0_132, %c0_133], %217 {strides = array<i32>} : memref<32x2xf32, #tpu.memory_space<vmem>>, vector<32x2xf32>,
    } else {
    }
    %c0 = arith.constant 0 : index
    %c0_1 = arith.constant 0 : index
    %c0_2 = arith.constant 0 : index
    %3 = vector.load %arg2[%c0, %c0_1, %c0_2] : memref<2x16x16xf32, #tpu.memory_space<vmem>>, vector<2x16x16xf32>
    %c0_3 = arith.constant 0 : index
    %c0_4 = arith.constant 0 : index
    %4 = vector.load %arg17[%c0_3, %c0_4] : memref<32x2xf32, #tpu.memory_space<vmem>>, vector<32x2xf32>
    %c0_5 = arith.constant 0 : index
    %c0_6 = arith.constant 0 : index
    %c0_7 = arith.constant 0 : index
    %5 = vector.load %arg16[%c0_5, %c0_6, %c0_7] : memref<2x32x32xf32, #tpu.memory_space<vmem>>, vector<1x32x32xf32>
    %6 = vector.shape_cast %5 : vector<1x32x32xf32> to vector<32x32xf32>
    %c0_8 = arith.constant 0 : index
    %c0_9 = arith.constant 0 : index
    %c0_10 = arith.constant 0 : index
    %7 = vector.load %arg5[%c0_8, %c0_9, %c0_10] : memref<3x2x96xf32, #tpu.memory_space<vmem>>, vector<1x2x96xf32>
    %8 = vector.shape_cast %7 : vector<1x2x96xf32> to vector<2x96xf32>
    %cst = arith.constant dense<0.000000e+00> : vector<32x96xf32>
    %9 = tpu.matmul %4, %8, %cst {dimension_numbers = #tpu.dot_dimension_numbers<[1], [0], [0], [1], [0, 0, 1, 1], [], []>} : vector<32x2xf32>, vector<2x96xf32>, vector<32x96xf32> -> vector<32x96xf32>
    %10 = vector.shape_cast %4 : vector<32x2xf32> to vector<2x16x2xf32>
    %cst_11 = arith.constant dense<0.000000e+00> : vector<2x16x2xf32>
    %11 = tpu.matmul %3, %10, %cst_11 {dimension_numbers = #tpu.dot_dimension_numbers<[2], [1], [1], [2], [0, 0, 0, 1, 1, 2], [0], [0]>} : vector<2x16x16xf32>, vector<2x16x2xf32>, vector<2x16x2xf32> -> vector<2x16x2xf32>
    %12 = vector.shape_cast %11 : vector<2x16x2xf32> to vector<32x2xf32>
    %c1 = arith.constant 1 : index
    %c0_12 = arith.constant 0 : index
    %c0_13 = arith.constant 0 : index
    %13 = vector.load %arg5[%c1, %c0_12, %c0_13] : memref<3x2x96xf32, #tpu.memory_space<vmem>>, vector<1x2x96xf32>
    %14 = vector.shape_cast %13 : vector<1x2x96xf32> to vector<2x96xf32>
    %cst_14 = arith.constant dense<0.000000e+00> : vector<32x96xf32>
    %15 = tpu.matmul %12, %14, %cst_14 {dimension_numbers = #tpu.dot_dimension_numbers<[1], [0], [0], [1], [0, 0, 1, 1], [], []>} : vector<32x2xf32>, vector<2x96xf32>, vector<32x96xf32> -> vector<32x96xf32>
    %16 = arith.addf %9, %15 : vector<32x96xf32>
    %17 = vector.shape_cast %12 : vector<32x2xf32> to vector<2x16x2xf32>
    %cst_15 = arith.constant dense<0.000000e+00> : vector<2x16x2xf32>
    %18 = tpu.matmul %3, %17, %cst_15 {dimension_numbers = #tpu.dot_dimension_numbers<[2], [1], [1], [2], [0, 0, 0, 1, 1, 2], [0], [0]>} : vector<2x16x16xf32>, vector<2x16x2xf32>, vector<2x16x2xf32> -> vector<2x16x2xf32>
    %19 = vector.shape_cast %18 : vector<2x16x2xf32> to vector<32x2xf32>
    %cst_16 = arith.constant 2.000000e+00 : f32
    %20 = vector.broadcast %cst_16 : f32 to vector<32x2xf32>
    %21 = arith.mulf %20, %19 : vector<32x2xf32>
    %22 = arith.subf %21, %4 : vector<32x2xf32>
    %c2 = arith.constant 2 : index
    %c0_17 = arith.constant 0 : index
    %c0_18 = arith.constant 0 : index
    %23 = vector.load %arg5[%c2, %c0_17, %c0_18] : memref<3x2x96xf32, #tpu.memory_space<vmem>>, vector<1x2x96xf32>
    %24 = vector.shape_cast %23 : vector<1x2x96xf32> to vector<2x96xf32>
    %cst_19 = arith.constant dense<0.000000e+00> : vector<32x96xf32>
    %25 = tpu.matmul %22, %24, %cst_19 {dimension_numbers = #tpu.dot_dimension_numbers<[1], [0], [0], [1], [0, 0, 1, 1], [], []>} : vector<32x2xf32>, vector<2x96xf32>, vector<32x96xf32> -> vector<32x96xf32>
    %26 = arith.addf %16, %25 : vector<32x96xf32>
    %c0_20 = arith.constant 0 : index
    %c0_21 = arith.constant 0 : index
    %27 = vector.load %arg8[%c0_20, %c0_21] : memref<1x96xf32, #tpu.memory_space<vmem>>, vector<1x96xf32>
    %28 = vector.broadcast %27 : vector<1x96xf32> to vector<32x96xf32>
    %29 = arith.addf %26, %28 : vector<32x96xf32>
    %c0_22 = arith.constant 0 : index
    %c0_23 = arith.constant 0 : index
    %c0_24 = arith.constant 0 : index
    %30 = vector.load %arg6[%c0_22, %c0_23, %c0_24] : memref<3x32x64xf32, #tpu.memory_space<vmem>>, vector<1x32x64xf32>
    %31 = vector.shape_cast %30 : vector<1x32x64xf32> to vector<32x64xf32>
    %cst_25 = arith.constant dense<0.000000e+00> : vector<32x64xf32>
    %32 = tpu.matmul %6, %31, %cst_25 {dimension_numbers = #tpu.dot_dimension_numbers<[1], [0], [0], [1], [0, 0, 1, 1], [], []>} : vector<32x32xf32>, vector<32x64xf32>, vector<32x64xf32> -> vector<32x64xf32>
    %33 = vector.shape_cast %6 : vector<32x32xf32> to vector<2x16x32xf32>
    %cst_26 = arith.constant dense<0.000000e+00> : vector<2x16x32xf32>
    %34 = tpu.matmul %3, %33, %cst_26 {dimension_numbers = #tpu.dot_dimension_numbers<[2], [1], [1], [2], [0, 0, 0, 1, 1, 2], [0], [0]>} : vector<2x16x16xf32>, vector<2x16x32xf32>, vector<2x16x32xf32> -> vector<2x16x32xf32>
    %35 = vector.shape_cast %34 : vector<2x16x32xf32> to vector<32x32xf32>
    %c1_27 = arith.constant 1 : index
    %c0_28 = arith.constant 0 : index
    %c0_29 = arith.constant 0 : index
    %36 = vector.load %arg6[%c1_27, %c0_28, %c0_29] : memref<3x32x64xf32, #tpu.memory_space<vmem>>, vector<1x32x64xf32>
    %37 = vector.shape_cast %36 : vector<1x32x64xf32> to vector<32x64xf32>
    %cst_30 = arith.constant dense<0.000000e+00> : vector<32x64xf32>
    %38 = tpu.matmul %35, %37, %cst_30 {dimension_numbers = #tpu.dot_dimension_numbers<[1], [0], [0], [1], [0, 0, 1, 1], [], []>} : vector<32x32xf32>, vector<32x64xf32>, vector<32x64xf32> -> vector<32x64xf32>
    %39 = arith.addf %32, %38 : vector<32x64xf32>
    %40 = vector.shape_cast %35 : vector<32x32xf32> to vector<2x16x32xf32>
    %cst_31 = arith.constant dense<0.000000e+00> : vector<2x16x32xf32>
    %41 = tpu.matmul %3, %40, %cst_31 {dimension_numbers = #tpu.dot_dimension_numbers<[2], [1], [1], [2], [0, 0, 0, 1, 1, 2], [0], [0]>} : vector<2x16x16xf32>, vector<2x16x32xf32>, vector<2x16x32xf32> -> vector<2x16x32xf32>
    %42 = vector.shape_cast %41 : vector<2x16x32xf32> to vector<32x32xf32>
    %cst_32 = arith.constant 2.000000e+00 : f32
    %43 = vector.broadcast %cst_32 : f32 to vector<32x32xf32>
    %44 = arith.mulf %43, %42 : vector<32x32xf32>
    %45 = arith.subf %44, %6 : vector<32x32xf32>
    %c2_33 = arith.constant 2 : index
    %c0_34 = arith.constant 0 : index
    %c0_35 = arith.constant 0 : index
    %46 = vector.load %arg6[%c2_33, %c0_34, %c0_35] : memref<3x32x64xf32, #tpu.memory_space<vmem>>, vector<1x32x64xf32>
    %47 = vector.shape_cast %46 : vector<1x32x64xf32> to vector<32x64xf32>
    %cst_36 = arith.constant dense<0.000000e+00> : vector<32x64xf32>
    %48 = tpu.matmul %45, %47, %cst_36 {dimension_numbers = #tpu.dot_dimension_numbers<[1], [0], [0], [1], [0, 0, 1, 1], [], []>} : vector<32x32xf32>, vector<32x64xf32>, vector<32x64xf32> -> vector<32x64xf32>
    %49 = arith.addf %39, %48 : vector<32x64xf32>
    %50 = vector.extract_strided_slice %29 {offsets = [0, 0], sizes = [32, 32], strides = [1, 1]} : vector<32x96xf32> to vector<32x32xf32>
    %51 = vector.extract_strided_slice %49 {offsets = [0, 0], sizes = [32, 32], strides = [1, 1]} : vector<32x64xf32> to vector<32x32xf32>
    %52 = arith.addf %50, %51 : vector<32x32xf32>
    %53 = arith.negf %52 : vector<32x32xf32>
    %54 = math.exp %53 : vector<32x32xf32>
    %cst_37 = arith.constant 1.000000e+00 : f32
    %55 = vector.broadcast %cst_37 : f32 to vector<32x32xf32>
    %56 = arith.addf %55, %54 : vector<32x32xf32>
    %57 = arith.divf %55, %56 : vector<32x32xf32>
    %58 = vector.extract_strided_slice %29 {offsets = [0, 32], sizes = [32, 32], strides = [1, 1]} : vector<32x96xf32> to vector<32x32xf32>
    %59 = vector.extract_strided_slice %49 {offsets = [0, 32], sizes = [32, 32], strides = [1, 1]} : vector<32x64xf32> to vector<32x32xf32>
    %60 = arith.addf %58, %59 : vector<32x32xf32>
    %61 = arith.negf %60 : vector<32x32xf32>
    %62 = math.exp %61 : vector<32x32xf32>
    %cst_38 = arith.constant 1.000000e+00 : f32
    %63 = vector.broadcast %cst_38 : f32 to vector<32x32xf32>
    %64 = arith.addf %63, %62 : vector<32x32xf32>
    %65 = arith.divf %63, %64 : vector<32x32xf32>
    %66 = vector.extract_strided_slice %29 {offsets = [0, 64], sizes = [32, 32], strides = [1, 1]} : vector<32x96xf32> to vector<32x32xf32>
    %67 = arith.mulf %57, %6 : vector<32x32xf32>
    %c0_39 = arith.constant 0 : index
    %c0_40 = arith.constant 0 : index
    %c0_41 = arith.constant 0 : index
    %68 = vector.load %arg7[%c0_39, %c0_40, %c0_41] : memref<3x32x32xf32, #tpu.memory_space<vmem>>, vector<1x32x32xf32>
    %69 = vector.shape_cast %68 : vector<1x32x32xf32> to vector<32x32xf32>
    %cst_42 = arith.constant dense<0.000000e+00> : vector<32x32xf32>
    %70 = tpu.matmul %67, %69, %cst_42 {dimension_numbers = #tpu.dot_dimension_numbers<[1], [0], [0], [1], [0, 0, 1, 1], [], []>} : vector<32x32xf32>, vector<32x32xf32>, vector<32x32xf32> -> vector<32x32xf32>
    %71 = vector.shape_cast %67 : vector<32x32xf32> to vector<2x16x32xf32>
    %cst_43 = arith.constant dense<0.000000e+00> : vector<2x16x32xf32>
    %72 = tpu.matmul %3, %71, %cst_43 {dimension_numbers = #tpu.dot_dimension_numbers<[2], [1], [1], [2], [0, 0, 0, 1, 1, 2], [0], [0]>} : vector<2x16x16xf32>, vector<2x16x32xf32>, vector<2x16x32xf32> -> vector<2x16x32xf32>
    %73 = vector.shape_cast %72 : vector<2x16x32xf32> to vector<32x32xf32>
    %c1_44 = arith.constant 1 : index
    %c0_45 = arith.constant 0 : index
    %c0_46 = arith.constant 0 : index
    %74 = vector.load %arg7[%c1_44, %c0_45, %c0_46] : memref<3x32x32xf32, #tpu.memory_space<vmem>>, vector<1x32x32xf32>
    %75 = vector.shape_cast %74 : vector<1x32x32xf32> to vector<32x32xf32>
    %cst_47 = arith.constant dense<0.000000e+00> : vector<32x32xf32>
    %76 = tpu.matmul %73, %75, %cst_47 {dimension_numbers = #tpu.dot_dimension_numbers<[1], [0], [0], [1], [0, 0, 1, 1], [], []>} : vector<32x32xf32>, vector<32x32xf32>, vector<32x32xf32> -> vector<32x32xf32>
    %77 = arith.addf %70, %76 : vector<32x32xf32>
    %78 = vector.shape_cast %73 : vector<32x32xf32> to vector<2x16x32xf32>
    %cst_48 = arith.constant dense<0.000000e+00> : vector<2x16x32xf32>
    %79 = tpu.matmul %3, %78, %cst_48 {dimension_numbers = #tpu.dot_dimension_numbers<[2], [1], [1], [2], [0, 0, 0, 1, 1, 2], [0], [0]>} : vector<2x16x16xf32>, vector<2x16x32xf32>, vector<2x16x32xf32> -> vector<2x16x32xf32>
    %80 = vector.shape_cast %79 : vector<2x16x32xf32> to vector<32x32xf32>
    %cst_49 = arith.constant 2.000000e+00 : f32
    %81 = vector.broadcast %cst_49 : f32 to vector<32x32xf32>
    %82 = arith.mulf %81, %80 : vector<32x32xf32>
    %83 = arith.subf %82, %67 : vector<32x32xf32>
    %c2_50 = arith.constant 2 : index
    %c0_51 = arith.constant 0 : index
    %c0_52 = arith.constant 0 : index
    %84 = vector.load %arg7[%c2_50, %c0_51, %c0_52] : memref<3x32x32xf32, #tpu.memory_space<vmem>>, vector<1x32x32xf32>
    %85 = vector.shape_cast %84 : vector<1x32x32xf32> to vector<32x32xf32>
    %cst_53 = arith.constant dense<0.000000e+00> : vector<32x32xf32>
    %86 = tpu.matmul %83, %85, %cst_53 {dimension_numbers = #tpu.dot_dimension_numbers<[1], [0], [0], [1], [0, 0, 1, 1], [], []>} : vector<32x32xf32>, vector<32x32xf32>, vector<32x32xf32> -> vector<32x32xf32>
    %87 = arith.addf %77, %86 : vector<32x32xf32>
    %88 = arith.addf %66, %87 : vector<32x32xf32>
    %89 = math.tanh %88 : vector<32x32xf32>
    %90 = arith.mulf %65, %6 : vector<32x32xf32>
    %cst_54 = arith.constant 1.000000e+00 : f32
    %91 = vector.broadcast %cst_54 : f32 to vector<32x32xf32>
    %92 = arith.subf %91, %65 : vector<32x32xf32>
    %93 = arith.mulf %92, %89 : vector<32x32xf32>
    %94 = arith.addf %90, %93 : vector<32x32xf32>
    %c0_55 = arith.constant 0 : index
    %c0_56 = arith.constant 0 : index
    %c0_57 = arith.constant 0 : index
    %95 = vector.load %arg16[%c0_55, %c0_56, %c0_57] : memref<2x32x32xf32, #tpu.memory_space<vmem>>, vector<1x32x32xf32>
    %96 = vector.shape_cast %95 : vector<1x32x32xf32> to vector<32x32xf32>
    %97 = vector.shape_cast %94 : vector<32x32xf32> to vector<1x32x32xf32>
    tpu.vector_store %arg16[%c0_55, %c0_56, %c0_57], %97 {strides = array<i32>} : memref<2x32x32xf32, #tpu.memory_space<vmem>>, vector<1x32x32xf32>,
    %c1_58 = arith.constant 1 : index
    %c0_59 = arith.constant 0 : index
    %c0_60 = arith.constant 0 : index
    %98 = vector.load %arg16[%c1_58, %c0_59, %c0_60] : memref<2x32x32xf32, #tpu.memory_space<vmem>>, vector<1x32x32xf32>
    %99 = vector.shape_cast %98 : vector<1x32x32xf32> to vector<32x32xf32>
    %c0_61 = arith.constant 0 : index
    %c0_62 = arith.constant 0 : index
    %c0_63 = arith.constant 0 : index
    %100 = vector.load %arg9[%c0_61, %c0_62, %c0_63] : memref<3x32x96xf32, #tpu.memory_space<vmem>>, vector<1x32x96xf32>
    %101 = vector.shape_cast %100 : vector<1x32x96xf32> to vector<32x96xf32>
    %cst_64 = arith.constant dense<0.000000e+00> : vector<32x96xf32>
    %102 = tpu.matmul %94, %101, %cst_64 {dimension_numbers = #tpu.dot_dimension_numbers<[1], [0], [0], [1], [0, 0, 1, 1], [], []>} : vector<32x32xf32>, vector<32x96xf32>, vector<32x96xf32> -> vector<32x96xf32>
    %103 = vector.shape_cast %94 : vector<32x32xf32> to vector<2x16x32xf32>
    %cst_65 = arith.constant dense<0.000000e+00> : vector<2x16x32xf32>
    %104 = tpu.matmul %3, %103, %cst_65 {dimension_numbers = #tpu.dot_dimension_numbers<[2], [1], [1], [2], [0, 0, 0, 1, 1, 2], [0], [0]>} : vector<2x16x16xf32>, vector<2x16x32xf32>, vector<2x16x32xf32> -> vector<2x16x32xf32>
    %105 = vector.shape_cast %104 : vector<2x16x32xf32> to vector<32x32xf32>
    %c1_66 = arith.constant 1 : index
    %c0_67 = arith.constant 0 : index
    %c0_68 = arith.constant 0 : index
    %106 = vector.load %arg9[%c1_66, %c0_67, %c0_68] : memref<3x32x96xf32, #tpu.memory_space<vmem>>, vector<1x32x96xf32>
    %107 = vector.shape_cast %106 : vector<1x32x96xf32> to vector<32x96xf32>
    %cst_69 = arith.constant dense<0.000000e+00> : vector<32x96xf32>
    %108 = tpu.matmul %105, %107, %cst_69 {dimension_numbers = #tpu.dot_dimension_numbers<[1], [0], [0], [1], [0, 0, 1, 1], [], []>} : vector<32x32xf32>, vector<32x96xf32>, vector<32x96xf32> -> vector<32x96xf32>
    %109 = arith.addf %102, %108 : vector<32x96xf32>
    %110 = vector.shape_cast %105 : vector<32x32xf32> to vector<2x16x32xf32>
    %cst_70 = arith.constant dense<0.000000e+00> : vector<2x16x32xf32>
    %111 = tpu.matmul %3, %110, %cst_70 {dimension_numbers = #tpu.dot_dimension_numbers<[2], [1], [1], [2], [0, 0, 0, 1, 1, 2], [0], [0]>} : vector<2x16x16xf32>, vector<2x16x32xf32>, vector<2x16x32xf32> -> vector<2x16x32xf32>
    %112 = vector.shape_cast %111 : vector<2x16x32xf32> to vector<32x32xf32>
    %cst_71 = arith.constant 2.000000e+00 : f32
    %113 = vector.broadcast %cst_71 : f32 to vector<32x32xf32>
    %114 = arith.mulf %113, %112 : vector<32x32xf32>
    %115 = arith.subf %114, %94 : vector<32x32xf32>
    %c2_72 = arith.constant 2 : index
    %c0_73 = arith.constant 0 : index
    %c0_74 = arith.constant 0 : index
    %116 = vector.load %arg9[%c2_72, %c0_73, %c0_74] : memref<3x32x96xf32, #tpu.memory_space<vmem>>, vector<1x32x96xf32>
    %117 = vector.shape_cast %116 : vector<1x32x96xf32> to vector<32x96xf32>
    %cst_75 = arith.constant dense<0.000000e+00> : vector<32x96xf32>
    %118 = tpu.matmul %115, %117, %cst_75 {dimension_numbers = #tpu.dot_dimension_numbers<[1], [0], [0], [1], [0, 0, 1, 1], [], []>} : vector<32x32xf32>, vector<32x96xf32>, vector<32x96xf32> -> vector<32x96xf32>
    %119 = arith.addf %109, %118 : vector<32x96xf32>
    %c0_76 = arith.constant 0 : index
    %c0_77 = arith.constant 0 : index
    %120 = vector.load %arg12[%c0_76, %c0_77] : memref<1x96xf32, #tpu.memory_space<vmem>>, vector<1x96xf32>
    %121 = vector.broadcast %120 : vector<1x96xf32> to vector<32x96xf32>
    %122 = arith.addf %119, %121 : vector<32x96xf32>
    %c0_78 = arith.constant 0 : index
    %c0_79 = arith.constant 0 : index
    %c0_80 = arith.constant 0 : index
    %123 = vector.load %arg10[%c0_78, %c0_79, %c0_80] : memref<3x32x64xf32, #tpu.memory_space<vmem>>, vector<1x32x64xf32>
    %124 = vector.shape_cast %123 : vector<1x32x64xf32> to vector<32x64xf32>
    %cst_81 = arith.constant dense<0.000000e+00> : vector<32x64xf32>
    %125 = tpu.matmul %99, %124, %cst_81 {dimension_numbers = #tpu.dot_dimension_numbers<[1], [0], [0], [1], [0, 0, 1, 1], [], []>} : vector<32x32xf32>, vector<32x64xf32>, vector<32x64xf32> -> vector<32x64xf32>
    %126 = vector.shape_cast %99 : vector<32x32xf32> to vector<2x16x32xf32>
    %cst_82 = arith.constant dense<0.000000e+00> : vector<2x16x32xf32>
    %127 = tpu.matmul %3, %126, %cst_82 {dimension_numbers = #tpu.dot_dimension_numbers<[2], [1], [1], [2], [0, 0, 0, 1, 1, 2], [0], [0]>} : vector<2x16x16xf32>, vector<2x16x32xf32>, vector<2x16x32xf32> -> vector<2x16x32xf32>
    %128 = vector.shape_cast %127 : vector<2x16x32xf32> to vector<32x32xf32>
    %c1_83 = arith.constant 1 : index
    %c0_84 = arith.constant 0 : index
    %c0_85 = arith.constant 0 : index
    %129 = vector.load %arg10[%c1_83, %c0_84, %c0_85] : memref<3x32x64xf32, #tpu.memory_space<vmem>>, vector<1x32x64xf32>
    %130 = vector.shape_cast %129 : vector<1x32x64xf32> to vector<32x64xf32>
    %cst_86 = arith.constant dense<0.000000e+00> : vector<32x64xf32>
    %131 = tpu.matmul %128, %130, %cst_86 {dimension_numbers = #tpu.dot_dimension_numbers<[1], [0], [0], [1], [0, 0, 1, 1], [], []>} : vector<32x32xf32>, vector<32x64xf32>, vector<32x64xf32> -> vector<32x64xf32>
    %132 = arith.addf %125, %131 : vector<32x64xf32>
    %133 = vector.shape_cast %128 : vector<32x32xf32> to vector<2x16x32xf32>
    %cst_87 = arith.constant dense<0.000000e+00> : vector<2x16x32xf32>
    %134 = tpu.matmul %3, %133, %cst_87 {dimension_numbers = #tpu.dot_dimension_numbers<[2], [1], [1], [2], [0, 0, 0, 1, 1, 2], [0], [0]>} : vector<2x16x16xf32>, vector<2x16x32xf32>, vector<2x16x32xf32> -> vector<2x16x32xf32>
    %135 = vector.shape_cast %134 : vector<2x16x32xf32> to vector<32x32xf32>
    %cst_88 = arith.constant 2.000000e+00 : f32
    %136 = vector.broadcast %cst_88 : f32 to vector<32x32xf32>
    %137 = arith.mulf %136, %135 : vector<32x32xf32>
    %138 = arith.subf %137, %99 : vector<32x32xf32>
    %c2_89 = arith.constant 2 : index
    %c0_90 = arith.constant 0 : index
    %c0_91 = arith.constant 0 : index
    %139 = vector.load %arg10[%c2_89, %c0_90, %c0_91] : memref<3x32x64xf32, #tpu.memory_space<vmem>>, vector<1x32x64xf32>
    %140 = vector.shape_cast %139 : vector<1x32x64xf32> to vector<32x64xf32>
    %cst_92 = arith.constant dense<0.000000e+00> : vector<32x64xf32>
    %141 = tpu.matmul %138, %140, %cst_92 {dimension_numbers = #tpu.dot_dimension_numbers<[1], [0], [0], [1], [0, 0, 1, 1], [], []>} : vector<32x32xf32>, vector<32x64xf32>, vector<32x64xf32> -> vector<32x64xf32>
    %142 = arith.addf %132, %141 : vector<32x64xf32>
    %143 = vector.extract_strided_slice %122 {offsets = [0, 0], sizes = [32, 32], strides = [1, 1]} : vector<32x96xf32> to vector<32x32xf32>
    %144 = vector.extract_strided_slice %142 {offsets = [0, 0], sizes = [32, 32], strides = [1, 1]} : vector<32x64xf32> to vector<32x32xf32>
    %145 = arith.addf %143, %144 : vector<32x32xf32>
    %146 = arith.negf %145 : vector<32x32xf32>
    %147 = math.exp %146 : vector<32x32xf32>
    %cst_93 = arith.constant 1.000000e+00 : f32
    %148 = vector.broadcast %cst_93 : f32 to vector<32x32xf32>
    %149 = arith.addf %148, %147 : vector<32x32xf32>
    %150 = arith.divf %148, %149 : vector<32x32xf32>
    %151 = vector.extract_strided_slice %122 {offsets = [0, 32], sizes = [32, 32], strides = [1, 1]} : vector<32x96xf32> to vector<32x32xf32>
    %152 = vector.extract_strided_slice %142 {offsets = [0, 32], sizes = [32, 32], strides = [1, 1]} : vector<32x64xf32> to vector<32x32xf32>
    %153 = arith.addf %151, %152 : vector<32x32xf32>
    %154 = arith.negf %153 : vector<32x32xf32>
    %155 = math.exp %154 : vector<32x32xf32>
    %cst_94 = arith.constant 1.000000e+00 : f32
    %156 = vector.broadcast %cst_94 : f32 to vector<32x32xf32>
    %157 = arith.addf %156, %155 : vector<32x32xf32>
    %158 = arith.divf %156, %157 : vector<32x32xf32>
    %159 = vector.extract_strided_slice %122 {offsets = [0, 64], sizes = [32, 32], strides = [1, 1]} : vector<32x96xf32> to vector<32x32xf32>
    %160 = arith.mulf %150, %99 : vector<32x32xf32>
    %c0_95 = arith.constant 0 : index
    %c0_96 = arith.constant 0 : index
    %c0_97 = arith.constant 0 : index
    %161 = vector.load %arg11[%c0_95, %c0_96, %c0_97] : memref<3x32x32xf32, #tpu.memory_space<vmem>>, vector<1x32x32xf32>
    %162 = vector.shape_cast %161 : vector<1x32x32xf32> to vector<32x32xf32>
    %cst_98 = arith.constant dense<0.000000e+00> : vector<32x32xf32>
    %163 = tpu.matmul %160, %162, %cst_98 {dimension_numbers = #tpu.dot_dimension_numbers<[1], [0], [0], [1], [0, 0, 1, 1], [], []>} : vector<32x32xf32>, vector<32x32xf32>, vector<32x32xf32> -> vector<32x32xf32>
    %164 = vector.shape_cast %160 : vector<32x32xf32> to vector<2x16x32xf32>
    %cst_99 = arith.constant dense<0.000000e+00> : vector<2x16x32xf32>
    %165 = tpu.matmul %3, %164, %cst_99 {dimension_numbers = #tpu.dot_dimension_numbers<[2], [1], [1], [2], [0, 0, 0, 1, 1, 2], [0], [0]>} : vector<2x16x16xf32>, vector<2x16x32xf32>, vector<2x16x32xf32> -> vector<2x16x32xf32>
    %166 = vector.shape_cast %165 : vector<2x16x32xf32> to vector<32x32xf32>
    %c1_100 = arith.constant 1 : index
    %c0_101 = arith.constant 0 : index
    %c0_102 = arith.constant 0 : index
    %167 = vector.load %arg11[%c1_100, %c0_101, %c0_102] : memref<3x32x32xf32, #tpu.memory_space<vmem>>, vector<1x32x32xf32>
    %168 = vector.shape_cast %167 : vector<1x32x32xf32> to vector<32x32xf32>
    %cst_103 = arith.constant dense<0.000000e+00> : vector<32x32xf32>
    %169 = tpu.matmul %166, %168, %cst_103 {dimension_numbers = #tpu.dot_dimension_numbers<[1], [0], [0], [1], [0, 0, 1, 1], [], []>} : vector<32x32xf32>, vector<32x32xf32>, vector<32x32xf32> -> vector<32x32xf32>
    %170 = arith.addf %163, %169 : vector<32x32xf32>
    %171 = vector.shape_cast %166 : vector<32x32xf32> to vector<2x16x32xf32>
    %cst_104 = arith.constant dense<0.000000e+00> : vector<2x16x32xf32>
    %172 = tpu.matmul %3, %171, %cst_104 {dimension_numbers = #tpu.dot_dimension_numbers<[2], [1], [1], [2], [0, 0, 0, 1, 1, 2], [0], [0]>} : vector<2x16x16xf32>, vector<2x16x32xf32>, vector<2x16x32xf32> -> vector<2x16x32xf32>
    %173 = vector.shape_cast %172 : vector<2x16x32xf32> to vector<32x32xf32>
    %cst_105 = arith.constant 2.000000e+00 : f32
    %174 = vector.broadcast %cst_105 : f32 to vector<32x32xf32>
    %175 = arith.mulf %174, %173 : vector<32x32xf32>
    %176 = arith.subf %175, %160 : vector<32x32xf32>
    %c2_106 = arith.constant 2 : index
    %c0_107 = arith.constant 0 : index
    %c0_108 = arith.constant 0 : index
    %177 = vector.load %arg11[%c2_106, %c0_107, %c0_108] : memref<3x32x32xf32, #tpu.memory_space<vmem>>, vector<1x32x32xf32>
    %178 = vector.shape_cast %177 : vector<1x32x32xf32> to vector<32x32xf32>
    %cst_109 = arith.constant dense<0.000000e+00> : vector<32x32xf32>
    %179 = tpu.matmul %176, %178, %cst_109 {dimension_numbers = #tpu.dot_dimension_numbers<[1], [0], [0], [1], [0, 0, 1, 1], [], []>} : vector<32x32xf32>, vector<32x32xf32>, vector<32x32xf32> -> vector<32x32xf32>
    %180 = arith.addf %170, %179 : vector<32x32xf32>
    %181 = arith.addf %159, %180 : vector<32x32xf32>
    %182 = math.tanh %181 : vector<32x32xf32>
    %183 = arith.mulf %158, %99 : vector<32x32xf32>
    %cst_110 = arith.constant 1.000000e+00 : f32
    %184 = vector.broadcast %cst_110 : f32 to vector<32x32xf32>
    %185 = arith.subf %184, %158 : vector<32x32xf32>
    %186 = arith.mulf %185, %182 : vector<32x32xf32>
    %187 = arith.addf %183, %186 : vector<32x32xf32>
    %c1_111 = arith.constant 1 : index
    %c0_112 = arith.constant 0 : index
    %c0_113 = arith.constant 0 : index
    %188 = vector.load %arg16[%c1_111, %c0_112, %c0_113] : memref<2x32x32xf32, #tpu.memory_space<vmem>>, vector<1x32x32xf32>
    %189 = vector.shape_cast %188 : vector<1x32x32xf32> to vector<32x32xf32>
    %190 = vector.shape_cast %187 : vector<32x32xf32> to vector<1x32x32xf32>
    tpu.vector_store %arg16[%c1_111, %c0_112, %c0_113], %190 {strides = array<i32>} : memref<2x32x32xf32, #tpu.memory_space<vmem>>, vector<1x32x32xf32>,
    %c0_114 = arith.constant 0 : index
    %c0_115 = arith.constant 0 : index
    %191 = vector.load %arg13[%c0_114, %c0_115] : memref<32x2xf32, #tpu.memory_space<vmem>>, vector<32x2xf32>
    %cst_116 = arith.constant dense<0.000000e+00> : vector<32x2xf32>
    %192 = tpu.matmul %187, %191, %cst_116 {dimension_numbers = #tpu.dot_dimension_numbers<[1], [0], [0], [1], [0, 0, 1, 1], [], []>} : vector<32x32xf32>, vector<32x2xf32>, vector<32x2xf32> -> vector<32x2xf32>
    %c0_117 = arith.constant 0 : index
    %c0_118 = arith.constant 0 : index
    %193 = vector.load %arg14[%c0_117, %c0_118] : memref<1x2xf32, #tpu.memory_space<vmem>>, vector<1x2xf32>
    %194 = vector.broadcast %193 : vector<1x2xf32> to vector<32x2xf32>
    %195 = arith.addf %192, %194 : vector<32x2xf32>
    %c0_119 = arith.constant 0 : index
    %c0_120 = arith.constant 0 : index
    %c0_121 = arith.constant 0 : index
    %196 = vector.load %arg15[%c0_119, %c0_120, %c0_121] : memref<1x32x2xf32, #tpu.memory_space<vmem>>, vector<1x32x2xf32>
    %197 = vector.shape_cast %196 : vector<1x32x2xf32> to vector<32x2xf32>
    %198 = vector.shape_cast %195 : vector<32x2xf32> to vector<1x32x2xf32>
    tpu.vector_store %arg15[%c0_119, %c0_120, %c0_121], %198 {strides = array<i32>} : memref<1x32x2xf32, #tpu.memory_space<vmem>>, vector<1x32x2xf32>,
    %199 = arith.index_cast %arg0 : i32 to index
    %200 = memref.load %arg1[%199] : memref<8xi32, #tpu.memory_space<smem>>
    %c0_i32_122 = arith.constant 0 : i32
    %201 = arith.cmpi sgt, %200, %c0_i32_122 : i32
    %202 = arith.extui %201 : i1 to i32
    %203 = arith.sitofp %202 : i32 to f32
    %c0_123 = arith.constant 0 : index
    %c0_124 = arith.constant 0 : index
    %c0_125 = arith.constant 0 : index
    %204 = vector.load %arg3[%c0_123, %c0_124, %c0_125] : memref<1x32x2xf32, #tpu.memory_space<vmem>>, vector<1x32x2xf32>
    %205 = vector.shape_cast %204 : vector<1x32x2xf32> to vector<32x2xf32>
    %206 = vector.broadcast %203 : f32 to vector<32x2xf32>
    %207 = arith.mulf %206, %205 : vector<32x2xf32>
    %cst_126 = arith.constant 1.000000e+00 : f32
    %208 = arith.subf %cst_126, %203 : f32
    %209 = vector.broadcast %208 : f32 to vector<32x2xf32>
    %210 = arith.mulf %209, %195 : vector<32x2xf32>
    %211 = arith.addf %207, %210 : vector<32x2xf32>
    %c0_127 = arith.constant 0 : index
    %c0_128 = arith.constant 0 : index
    %212 = vector.load %arg17[%c0_127, %c0_128] : memref<32x2xf32, #tpu.memory_space<vmem>>, vector<32x2xf32>
    tpu.vector_store %arg17[%c0_127, %c0_128], %211 {strides = array<i32>} : memref<32x2xf32, #tpu.memory_space<vmem>>, vector<32x2xf32>,
    return
  }
  func.func @transform_0(%arg0: i32, %arg1: memref<8xi32, #tpu.memory_space<smem>>) -> (i32, i32, i32) {
    %c0_i32 = arith.constant 0 : i32
    %c0_i32_0 = arith.constant 0 : i32
    %c0_i32_1 = arith.constant 0 : i32
    %c0_i32_2 = arith.constant 0 : i32
    return %c0_i32, %c0_i32_0, %c0_i32_1 : i32, i32, i32
  }
  func.func @transform_1(%arg0: i32, %arg1: memref<8xi32, #tpu.memory_space<smem>>) -> (i32, i32, i32) {
    %c0_i32 = arith.constant 0 : i32
    %c0_i32_0 = arith.constant 0 : i32
    %c0_i32_1 = arith.constant 0 : i32
    %c0_i32_2 = arith.constant 0 : i32
    return %c0_i32, %c0_i32_0, %c0_i32_1 : i32, i32, i32
  }
  func.func @transform_3(%arg0: i32, %arg1: memref<8xi32, #tpu.memory_space<smem>>) -> (i32, i32, i32) {
    %c0_i32 = arith.constant 0 : i32
    %c0_i32_0 = arith.constant 0 : i32
    %c0_i32_1 = arith.constant 0 : i32
    %c0_i32_2 = arith.constant 0 : i32
    return %c0_i32, %c0_i32_0, %c0_i32_1 : i32, i32, i32
  }
  func.func @transform_4(%arg0: i32, %arg1: memref<8xi32, #tpu.memory_space<smem>>) -> (i32, i32, i32) {
    %c0_i32 = arith.constant 0 : i32
    %c0_i32_0 = arith.constant 0 : i32
    %c0_i32_1 = arith.constant 0 : i32
    %c0_i32_2 = arith.constant 0 : i32
    return %c0_i32, %c0_i32_0, %c0_i32_1 : i32, i32, i32
  }
  func.func @transform_5(%arg0: i32, %arg1: memref<8xi32, #tpu.memory_space<smem>>) -> (i32, i32, i32) {
    %c0_i32 = arith.constant 0 : i32
    %c0_i32_0 = arith.constant 0 : i32
    %c0_i32_1 = arith.constant 0 : i32
    %c0_i32_2 = arith.constant 0 : i32
    return %c0_i32, %c0_i32_0, %c0_i32_1 : i32, i32, i32
  }
  func.func @transform_6(%arg0: i32, %arg1: memref<8xi32, #tpu.memory_space<smem>>) -> (i32, i32) {
    %c0_i32 = arith.constant 0 : i32
    %c0_i32_0 = arith.constant 0 : i32
    %c0_i32_1 = arith.constant 0 : i32
    return %c0_i32, %c0_i32_0 : i32, i32
  }
  func.func @transform_7(%arg0: i32, %arg1: memref<8xi32, #tpu.memory_space<smem>>) -> (i32, i32, i32) {
    %c0_i32 = arith.constant 0 : i32
    %c0_i32_0 = arith.constant 0 : i32
    %c0_i32_1 = arith.constant 0 : i32
    %c0_i32_2 = arith.constant 0 : i32
    return %c0_i32, %c0_i32_0, %c0_i32_1 : i32, i32, i32
  }
  func.func @transform_8(%arg0: i32, %arg1: memref<8xi32, #tpu.memory_space<smem>>) -> (i32, i32, i32) {
    %c0_i32 = arith.constant 0 : i32
    %c0_i32_0 = arith.constant 0 : i32
    %c0_i32_1 = arith.constant 0 : i32
    %c0_i32_2 = arith.constant 0 : i32
    return %c0_i32, %c0_i32_0, %c0_i32_1 : i32, i32, i32
  }
  func.func @transform_9(%arg0: i32, %arg1: memref<8xi32, #tpu.memory_space<smem>>) -> (i32, i32, i32) {
    %c0_i32 = arith.constant 0 : i32
    %c0_i32_0 = arith.constant 0 : i32
    %c0_i32_1 = arith.constant 0 : i32
    %c0_i32_2 = arith.constant 0 : i32
    return %c0_i32, %c0_i32_0, %c0_i32_1 : i32, i32, i32
  }
  func.func @transform_10(%arg0: i32, %arg1: memref<8xi32, #tpu.memory_space<smem>>) -> (i32, i32) {
    %c0_i32 = arith.constant 0 : i32
    %c0_i32_0 = arith.constant 0 : i32
    %c0_i32_1 = arith.constant 0 : i32
    return %c0_i32, %c0_i32_0 : i32, i32
  }
  func.func @transform_11(%arg0: i32, %arg1: memref<8xi32, #tpu.memory_space<smem>>) -> (i32, i32) {
    %c0_i32 = arith.constant 0 : i32
    %c0_i32_0 = arith.constant 0 : i32
    %c0_i32_1 = arith.constant 0 : i32
    return %c0_i32, %c0_i32_0 : i32, i32
  }
  func.func @transform_12(%arg0: i32, %arg1: memref<8xi32, #tpu.memory_space<smem>>) -> (i32, i32) {
    %c0_i32 = arith.constant 0 : i32
    %c0_i32_0 = arith.constant 0 : i32
    %c0_i32_1 = arith.constant 0 : i32
    return %c0_i32, %c0_i32_0 : i32, i32
  }
  func.func @transform_13(%arg0: i32, %arg1: memref<8xi32, #tpu.memory_space<smem>>) -> (i32, i32, i32) {
    %c0_i32 = arith.constant 0 : i32
    %c0_i32_0 = arith.constant 0 : i32
    %c0_i32_1 = arith.constant 0 : i32
    return %arg0, %c0_i32, %c0_i32_0 : i32, i32, i32
  }
}

</mosaic_0001>

<bundles_post_ra>
// kernel: tpu_custom_call.1
= control target key start
LH: loop header
LB: loop body
LE: loop exit
PB: predicated region body
PF: predicated region fallthrough
CT: control target
= control target key end

     0   :  { %s6580_s0 = inlined_call_operand.vmem [shape: s32[8], index: 0, kind: input, shape index: {}]   ;;  %s6581_s1 = inlined_call_operand.hbm [shape: f32[2,16,16], index: 1, kind: input, shape index: {}]   ;;  %s6582_s2 = inlined_call_operand.vmem [shape: f32[8,32,2], index: 2, kind: input, shape index: {}]   ;;  %s6583_s3 = inlined_call_operand.hbm [shape: f32[2,32,32], index: 3, kind: input, shape index: {}]   ;;  %s6584_s4 = inlined_call_operand.vmem [shape: f32[3,2,96], index: 4, kind: input, shape index: {}]   ;;  %s6585_s5 = inlined_call_operand.vmem [shape: f32[3,32,64], index: 5, kind: input, shape index: {}]   ;;  %s6586_s6 = inlined_call_operand.vmem [shape: f32[3,32,32], index: 6, kind: input, shape index: {}]   ;;  %s6587_s7 = inlined_call_operand.vmem [shape: f32[1,96], index: 7, kind: input, shape index: {}]   ;;  %s6588_s8 = inlined_call_operand.vmem [shape: f32[3,32,96], index: 8, kind: input, shape index: {}]   ;;  %s6589_s9 = inlined_call_operand.hbm [shape: f32[3,32,64], index: 9, kind: input, shape index: {}]   ;;  %s6590_s10 = inlined_call_operand.hbm [shape: f32[3,32,32], index: 10, kind: input, shape index: {}]   ;;  %s6591_s11 = inlined_call_operand.vmem [shape: f32[1,96], index: 11, kind: input, shape index: {}]   ;;  %s6592_s12 = inlined_call_operand.vmem [shape: f32[32,2], index: 12, kind: input, shape index: {}]   ;;  %s6593_s13 = inlined_call_operand.vmem [shape: f32[1,2], index: 13, kind: input, shape index: {}]   ;;  %s6594_s14 = inlined_call_operand.vmem [shape: f32[8,32,2], index: 14, kind: output, shape index: {}]  }
   0x1   :  { %s19_s15 = sshll.u32 %s6580_s0, 4  ;;  %s20_s15 = int_to_ptr.vmem [resolvable:$true] %s19_s15 }
   0x2   :  { %s5613_s16 = scalar_lea.vmem %s20_s15, 16  ;;  %p5618_p1 = scmp.lt.s32.totalorder %s20_s15, %s20_s15 }
   0x3   :  { %p5614_p0 = scmp.ne.s32.totalorder %s20_s15, %s5613_s16  ;;  %p5619_p2 = scmp.lt.s32.totalorder %s5613_s16, %s5613_s16 }
   0x5   :  { %p5620_p3 = por %p5619_p2, %p5618_p1 }
   0x7   :  { %p5621_p4 = pnand %p5620_p3, %p5614_p0 }
   0x9   :  { %5624 = shalt.err (!%p5621_p4)  }
   0xa   :  { %s5743_s17 = smov [#allocation6]  }
   0xb   :  { %22 = dma.vmem_to_smem %s20_s15, 16, %s5743_s17, [#allocation5] }
   0xc   :  { %5727 = dma.done.wait [#allocation5], 16 }
   0xd   :  { %5728 = vsyncadd [#allocation5], 4294967280 }
   0xe   :  { %24 = sfence }
   0xf   :  { %25 = vsyncpa [#allocation8], 0 }
  0x10   :  { %26 = vsyncpa [#allocation10], 0  ;;  %s5832_s18 = smov 0  }
  0x11 LB: > { %s5838_s0 = sadd.s32 4294967295, %s5741_s18   ;;  %p4680_p5 = scmp.ge.s32.totalorder %s5741_s18, 1  ;;  %s5741_s18 = sphi %s5832_s18, %s32_s18  }
  0x12   : > { %p315_p6 = scmp.lt.s32.totalorder %s5741_s18, 9  ;;  %p5536_p8 = scmp.eq.s32.totalorder %s5838_s0, 0 }
  0x13   : > { %s5744_s20 = smov [#allocation9]   ;;  %s5745_s22 = smov [#allocation7]  }
  0x14   : > { %p5844_p9 = pnand %p4680_p5, %p315_p6  ;;  %s358_s21 = sshll.u32 %s5744_s20, 4  ;;  %s359_s21 = int_to_ptr.vmem [resolvable:$true] %s358_s21 }
  0x15   : > { %s327_s23 = sshll.u32 %s5745_s22, 4  ;;  %s5746_s25 = smov [#allocation11]   ;;  %s328_s23 = int_to_ptr.vmem [resolvable:$true] %s327_s23 }
  0x16   : > { %p5526_p10 = pneg %p5844_p9  ;;  %s371_s26 = sshll.u32 %s5746_s25, 4  ;;  %s5856_s26 = int_to_ptr.vmem [resolvable:$true] %s371_s26 }
  0x17   : > { %s5636_s27 = scalar_lea.vmem %s359_s21, 1536  ;;  %p5644_p2 = scmp.lt.s32.totalorder %s359_s21, %s359_s21 }
  0x18   : > { %p5852_p11 = pnand %p5536_p8, %p5526_p10  ;;  %p5637_p13 = scmp.ne.s32.totalorder %s359_s21, %s5636_s27 }
  0x19   : > { %p5645_p3 = scmp.lt.s32.totalorder %s5636_s27, %s5636_s27 }
  0x1a   : > { %p5627_p12 = pneg %p5852_p11 }
  0x1b   : > { %p5646_p4 = por %p5645_p3, %p5644_p2 }
  0x1c   : > { %p5639_p0 = pnand %p5637_p13, %p5627_p12 }
  0x1e   : > { %p5640_p1 = pneg %p5639_p0 }
  0x20   : > { %p5647_p5 = pnand %p5646_p4, %p5640_p1 }
  0x22   : > { %5650 = shalt.err (!%p5647_p5)
}
  0x23   : > { %s5747_s28 = smov 128   ;;  %s5748_s29 = smov 8  }
  0x24   : > { %5532 = dma.hbm_to_vmem [thread:$0]  (!%p5852_p11), %s6589_s9, 1536, %s359_s21, [#allocation10], %s5747_s28, %s5747_s28, %s5748_s29  }
  0x25   : > { %s5662_s16 = scalar_lea.vmem %s328_s23, 512  ;;  %p5670_p0 = scmp.lt.s32.totalorder %s328_s23, %s328_s23 }
  0x26   : > { %p5663_p6 = scmp.ne.s32.totalorder %s328_s23, %s5662_s16  ;;  %p5671_p7 = scmp.lt.s32.totalorder %s5662_s16, %s5662_s16 }
  0x28   : > { %p5665_p10 = pnand %p5663_p6, %p5627_p12  ;;  %p5672_p2 = por %p5671_p7, %p5670_p0 }
  0x2a   : > { %p5666_p13 = pneg %p5665_p10 }
  0x2c   : > { %p5673_p1 = pnand %p5672_p2, %p5666_p13 }
  0x2e   : > { %5676 = shalt.err (!%p5673_p1)
}
  0x2f   : > { %5529 = dma.hbm_to_vmem [thread:$0]  (!%p5852_p11), %s6581_s1, 512, %s328_s23, [#allocation8], %s5747_s28, %s5747_s28, %s5748_s29  }
  0x30   : > { %s5688_s21 = scalar_lea.vmem %s5856_s26, 1536  ;;  %p5696_p7 = scmp.lt.s32.totalorder %s5856_s26, %s5856_s26 }
  0x31   : > { %p5689_p3 = scmp.ne.s32.totalorder %s5856_s26, %s5688_s21  ;;  %p5697_p6 = scmp.lt.s32.totalorder %s5688_s21, %s5688_s21 }
  0x33   : > { %p5691_p4 = pnand %p5689_p3, %p5627_p12  ;;  %p5698_p10 = por %p5697_p6, %p5696_p7 }
  0x35   : > { %p5692_p5 = pneg %p5691_p4 }
  0x37   : > { %p5699_p13 = pnand %p5698_p10, %p5692_p5 }
  0x39   : > { %5702 = shalt.err (!%p5699_p13)
}
  0x3a   : > { %5535 = dma.hbm_to_vmem [thread:$0]  (!%p5852_p11), %s6590_s10, 1536, %s5856_s26, [#allocation10], %s5747_s28, %s5747_s28, %s5748_s29  }
  0x3b   : > { %396 = sbr.rel (%p5844_p9) target bundleno = 3957 (0xf75), region = 68 }
  0x40   : > { %5730 = dma.done.wait (%p5536_p8), [#allocation8], 512  }
  0x41   : > { %5732 = vsyncadd (%p5536_p8), [#allocation8], 4294966784 }
  0x42   : > { %5734 = dma.done.wait (%p5536_p8), [#allocation10], 3072  }
  0x43   : > { %5736 = vsyncadd (%p5536_p8), [#allocation10], 4294964224  ;;  %p441_p12 = scmp.lt.s32.totalorder %s5838_s0, 7  ;;  %p6597_p9 = scmp.ne.s32.totalorder %s5838_s0, 0 }
  0x44   : > { %s5749_s28 = smov (!%p6597_p9), [#allocation2]  }
  0x45   : > { %s442_s23 = scalar_select %p441_p12, %s5838_s0, 7 }
  0x46   : > { %449 = sbr.rel (%p6597_p9) target bundleno = 85 (0x55), region = 84  ;;  %s457_s29 = sshll.u32 (!%p6597_p9), %s5749_s28, 4  ;;  %s458_s29 = int_to_ptr.vmem [resolvable:$true] %s457_s29 }
  0x47   : > { %s4858_s24 = sshll.u32 %s442_s23, 5  ;;  %s5711_s30 = scalar_lea.vmem (!%p6597_p9), %s458_s29, 1024 }
  0x48   : > { %s5904_s27 = scalar_lea.vmem %s6594_s14, %s4858_s24  ;;  %p5712_p11 = scmp.ne.s32.totalorder (!%p6597_p9), %s458_s29, %s5711_s30 }
  0x49   : > { %p5716_p0 = scmp.lt.s32.totalorder (!%p6597_p9), %s458_s29, %s458_s29  ;;  %p5717_p8 = scmp.lt.s32.totalorder (!%p6597_p9), %s5711_s30, %s5711_s30 }
  0x4b   : > { %p5718_p2 = por %p5717_p8, %p5716_p0 }
  0x4d   : > { %p5719_p1 = pnand %p5718_p2, %p5712_p11 }
  0x4f   : > { %5722 = shalt.err (!%p5719_p1)  }
  0x50   : > { %460 = dma.hbm_to_vmem [thread:$0]  %s6583_s3, 1024, %s458_s29, [#allocation4] }
  0x51   : > { %5737 = dma.done.wait [#allocation4], 1024 }
  0x52   : > { %5738 = vsyncadd [#allocation4], 4294966272  ;;  %vm465_vm0 = vcmask 15360   ;;  %v5750_v0 = vmov 0.0  }
  0x53   : > { %466 = vst.msk [vmem:[#allocation3] sm:$0xff] %vm465_vm0, %v5750_v0  ;;  %467 = vst.msk [vmem:[#allocation3 + $0x8] sm:$0xff] %vm465_vm0, %v5750_v0 }
  0x54   : > { %468 = vst.msk [vmem:[#allocation3 + $0x10] sm:$0xff] %vm465_vm0, %v5750_v0  ;;  %469 = vst.msk [vmem:[#allocation3 + $0x18] sm:$0xff] %vm465_vm0, %v5750_v0 }
  0x55 PF: > { %v5915_v3 = vld [vmem:[#allocation7] sm:$0xff]  ;;  %vm483_vm1 = vcmask 130048   ;;  %vm661_vm2 = vcmask 1041408   ;;  %v5921_v4 = vld [vmem:[#allocation7 + $0x8] sm:$0xff]  ;;  %v5929_v7 = vld [vmem:[#allocation7 + $0x10] sm:$0xff]  ;;  %vm648_vm3 = vcmask 15360  }
  0x56   : > { %5102 = vmatprep.mubr.msk.f32.mxu1 %vm483_vm1, %v5915_v3  ;;  %v4695_v6 = vld [vmem:[%s6584_s4 + $0x2] sm:$0x3]  ;;  %v5942_v9 = vld [vmem:[#allocation7 + $0x18] sm:$0xff]  ;;  %v482_v10 = vld [vmem:[%s6584_s4] sm:$0x3]  ;;  %vm1284_vm4 = vcmask 261120  }
  0x57   : > { %5112 = vmatprep.subr.msk.mxu0 %vm661_vm2, %v4695_v6  ;;  %v5966_v15 = vld [vmem:[#allocation2 + $0x8] sm:$0xff]  ;;  %v5971_v16 = vld [vmem:[#allocation2] sm:$0xff]  ;;  %v5979_v17 = vld [vmem:[#allocation2 + $0x18] sm:$0xff]  ;;  %s5751_s17 = smov 64   ;;  %s5752_s20 = smov 32  }
  0x58   : > { %5113 = vmatpush3.msk.msra.mxu0 %vm661_vm2, %v4695_v6  ;;  %v5985_v18 = vld [vmem:[#allocation2 + $0x10] sm:$0xff]  ;;  %v4710_v19 = vld [vmem:[%s6584_s4 + $0x4] sm:$0x3]  ;;  %v4724_v20 = vld [vmem:[%s6585_s5 + $0x38] sm:$0xff]  ;;  %s5753_s21 = smov 96  }
  0x59   : > { %v1128_v21 = vld [vmem:[%s6585_s5 + $0x18] sm:$0xff]  ;;  %v1127_v22 = vld [vmem:[%s6585_s5 + $0x10] sm:$0xff]  ;;  %v1126_v23 = vld [vmem:[%s6585_s5 + $0x8] sm:$0xff] }
  0x5a   : > { %v5911_v1 = vld [vmem:[#allocation3 + $0x8] sm:$0xff]  ;;  %v5913_v2 = vld [vmem:[#allocation3] sm:$0xff]  ;;  %v4723_v47 = vld [vmem:[%s6585_s5 + $0x30] sm:$0xff] }
  0x5b   : > { %5098 = vmatprep.subr.mxu1 %v5911_v1  ;;  %v5923_v5 = vld [vmem:[#allocation3 + $0x18] sm:$0xff]  ;;  %v5933_v8 = vld [vmem:[#allocation3 + $0x10] sm:$0xff]  ;;  %v1125_v24 = vld [vmem:[%s6585_s5] sm:$0xff] }
  0x5c   : > { %5099 = vmatpush3.msra.mxu1 %v5911_v1  ;;  %v4722_v48 = vld [vmem:[%s6585_s5 + $0x28] sm:$0xff]  ;;  %v4721_v51 = vld [vmem:[%s6585_s5 + $0x20] sm:$0xff]  ;;  %v4740_v53 = vld [vmem:[%s6585_s5 + $0x58] sm:$0xff] }
  0x5d   : > { %5100 = vmatprep.subr.mxu1 %v5913_v2  ;;  %v4739_v54 = vld [vmem:[%s6585_s5 + $0x50] sm:$0xff]  ;;  %v4738_v55 = vld [vmem:[%s6585_s5 + $0x48] sm:$0xff]  ;;  %v4737_v56 = vld [vmem:[%s6585_s5 + $0x40] sm:$0xff] }
  0x5e   : > { %5101 = vmatpush3.msra.mxu1 %v5913_v2 }
  0x5f   : > { %5103 = vmatmul.mubr.msk.f32.vlgmr.msra.gmra.mxu1 %vm483_vm1, %v5921_v4  ;;  %5105 = vmatprep.subr.mxu1 %v5923_v5 }
  0x60   : > { %5106 = vmatpush3.msra.mxu1 %v5923_v5  ;;  %5109 = vmatprep.mubr.msk.f32.mxu1 %vm483_vm1, %v5929_v7 }
  0x61   : > { %5107 = vmatprep.subr.mxu1 %v5933_v8 }
  0x62   : > { %5108 = vmatpush3.msra.mxu1 %v5933_v8 }
  0x63   : > { %5110 = vmatmul.mubr.msk.f32.vlgmr.msra.gmra.mxu1 %vm483_vm1, %v5942_v9  ;;  %5120 = vmatprep.subr.msk.mxu1 %vm661_vm2, %v482_v10 }
  0x64   : > { %5121 = vmatpush3.msk.msra.mxu1 %vm661_vm2, %v482_v10  ;;  %5122 = vmatprep.mubr.msk.f32.mxu1 %vm648_vm3, %v5913_v2 }
  0x67   : > { %5123 = vmatmul.mubr.msk.f32.vlgmr.msra.gmra.mxu1 %vm648_vm3, %v5911_v1 }
  0x68   : > { %5125 = vmatprep.mubr.msk.f32.mxu1 %vm648_vm3, %v5933_v8 }
  0x6b   : > { %5126 = vmatmul.mubr.msk.f32.gmra.mxu1 %vm648_vm3, %v5923_v5 }
  0x6c   : > { %5139 = vmatprep.mubr.msk.f32.mxu1 %vm483_vm1, %v5929_v7 }
 0x11f   : > { %v5104_v11 = vpop.f32.mrf.mxu1 }
 0x120   : > { %5128 = vmatprep.subr.mxu0 %v5104_v11 }
 0x121   : > { %v556_v12 = vpop.f32.mrf.mxu1 }
 0x122   : > { %5114 = vmatprep.mubr.msk.f32.mxu0 %vm648_vm3, %v556_v12 }
 0x123   : > { %v5111_v13 = vpop.f32.mrf.mxu1  ;;  %5115 = vmatmul.mubr.msk.f32.vlgmr.msra.gmra.mxu0 %vm648_vm3, %v5104_v11 }
 0x124   : > { %5129 = vmatpush3.msra.mxu0 %v5104_v11  ;;  %5135 = vmatprep.subr.mxu1 %v5111_v13 }
 0x125   : > { %5130 = vmatprep.subr.mxu0 %v556_v12  ;;  %v637_v14 = vpop.f32.mrf.mxu1  ;;  %5136 = vmatpush3.msra.mxu1 %v5111_v13 }
 0x126   : > { %5131 = vmatpush3.msra.mxu0 %v556_v12  ;;  %5117 = vmatprep.mubr.msk.f32.mxu0 %vm648_vm3, %v637_v14 }
 0x127   : > { %5137 = vmatprep.subr.mxu1 %v637_v14  ;;  %5118 = vmatmul.mubr.msk.f32.gmra.mxu0 %vm648_vm3, %v5111_v13  ;;  %v6025_v25 = vpop.f32.mrf.mxu1 }
 0x128   : > { %5138 = vmatpush3.msra.mxu1 %v637_v14  ;;  %5132 = vmatprep.mubr.msk.f32.mxu0 %vm483_vm1, %v5915_v3 }
 0x129   : > { %5140 = vmatmul.mubr.msk.f32.vlgmr.msra.gmra.mxu1 %vm483_vm1, %v5942_v9  ;;  %5150 = vmatprep.subr.mxu1 %v5966_v15  ;;  %v6027_v26 = vpop.f32.mrf.mxu1 }
 0x12a   : > { %5151 = vmatpush3.msra.mxu1 %v5966_v15  ;;  %5154 = vmatprep.mubr.msk.f32.mxu1 %vm483_vm1, %v5915_v3 }
 0x12b   : > { %5133 = vmatmul.mubr.msk.f32.vlgmr.msra.gmra.mxu0 %vm483_vm1, %v5921_v4  ;;  %5152 = vmatprep.subr.mxu1 %v5971_v16  ;;  %v6031_v28 = vpop.f32.mrf.mxu1 }
 0x12c   : > { %5153 = vmatpush3.msra.mxu1 %v5971_v16  ;;  %5142 = vmatprep.subr.msk.mxu0 %vm661_vm2, %v4710_v19 }
 0x12d   : > { %5155 = vmatmul.mubr.msk.f32.vlgmr.msra.gmra.mxu1 %vm483_vm1, %v5921_v4  ;;  %5157 = vmatprep.subr.mxu1 %v5979_v17  ;;  %v841_v31 = vpop.f32.mrf.mxu1 }
 0x12e   : > { %5158 = vmatpush3.msra.mxu1 %v5979_v17  ;;  %5161 = vmatprep.mubr.msk.f32.mxu1 %vm483_vm1, %v5929_v7 }
 0x12f   : > { %5159 = vmatprep.subr.mxu1 %v5985_v18  ;;  %5143 = vmatpush3.msk.msra.mxu0 %vm661_vm2, %v4710_v19 }
 0x130   : > { %5160 = vmatpush3.msra.mxu1 %v5985_v18  ;;  %5164 = vmatprep.subr.mxu0 %v4724_v20 }
 0x131   : > { %5162 = vmatmul.mubr.msk.f32.vlgmr.msra.gmra.mxu1 %vm483_vm1, %v5942_v9  ;;  %5178 = vmatprep.subr.mxu1 %v1128_v21 }
 0x132   : > { %5179 = vmatpush3.msra.mxu1 %v1128_v21  ;;  %5186 = vmatprep.mubr.msk.f32.mxu1 %vm1284_vm4, %v5971_v16 }
 0x133   : > { %5180 = vmatprep.subr.mxu1 %v1127_v22 }
 0x134   : > { %5181 = vmatpush3.msra.mxu1 %v1127_v22 }
 0x135   : > { %5182 = vmatprep.subr.mxu1 %v1126_v23 }
 0x136   : > { %5183 = vmatpush3.msra.mxu1 %v1126_v23 }
 0x137   : > { %5184 = vmatprep.subr.mxu1 %v1125_v24 }
 0x138   : > { %5185 = vmatpush3.msra.mxu1 %v1125_v24 }
 0x139   : > { %5187 = vmatmul.mubr.msk.f32.vlgmr.msra.gmra.mxu1 %vm1284_vm4, %v5966_v15  ;;  %5206 = vmatprep.subr.mxu1 %v4740_v53 }
 0x13a   : > { %5189 = vmatprep.mubr.msk.f32.mxu1 %vm1284_vm4, %v5985_v18  ;;  %5207 = vmatpush3.msra.mxu1 %v4740_v53 }
 0x13b   : > { %5208 = vmatprep.subr.mxu1 %v4739_v54 }
 0x13c   : > { %5209 = vmatpush3.msra.mxu1 %v4739_v54 }
 0x13d   : > { %5190 = vmatmul.mubr.msk.f32.gmra.mxu1 %vm1284_vm4, %v5979_v17  ;;  %5210 = vmatprep.subr.mxu1 %v4738_v55 }
 0x13e   : > { %5211 = vmatpush3.msra.mxu1 %v4738_v55 }
 0x13f   : > { %5212 = vmatprep.subr.mxu1 %v4737_v56 }
 0x140   : > { %5213 = vmatpush3.msra.mxu1 %v4737_v56 }
 0x1e3   : > { %v6029_v27 = vpop.f32.mrf.mxu0 }
 0x1e4   : > { %v837_v57 = vadd.f32 %v6025_v25, %v6029_v27 }
 0x1e5   : > { %v6033_v29 = vpop.f32.mrf.mxu0 }
 0x1e6   : > { %v832_v59 = vadd.f32 %v6027_v26, %v6033_v29  ;;  %v4755_v29 = vld [vmem:[%s6586_s6 + $0x30] sm:$0xff] }
 0x1e7   : > { %v6035_v30 = vpop.f32.mrf.mxu0 }
 0x1e8   : > { %v847_v62 = vadd.f32 %v6031_v28, %v6035_v30  ;;  %v4756_v28 = vld [vmem:[%s6586_s6 + $0x38] sm:$0xff]  ;;  %v4754_v30 = vld [vmem:[%s6586_s6 + $0x28] sm:$0xff] }
 0x1e9   : > { %v741_v32 = vpop.f32.mrf.mxu0  ;;  %v5141_v33 = vpop.f32.mrf.mxu1  ;;  %5234 = vmatprep.subr.mxu1 %v4756_v28 }
 0x1ea   : > { %v6037_v34 = vadd.f32 %v841_v31, %v741_v32  ;;  %v1003_v45 = vmul.f32 2.0, %v5141_v33  ;;  %v4753_v31 = vld [vmem:[%s6586_s6 + $0x20] sm:$0xff] }
 0x1eb   : > { %v5134_v35 = vpop.f32.mrf.mxu0  ;;  %v991_v36 = vpop.f32.mrf.mxu1 }
 0x1ec   : > { %v1002_v37 = vmul.f32 2.0, %v991_v36  ;;  %v1001_v38 = vmul.f32 2.0, %v5134_v35  ;;  %v1007_v49 = vsub.f32 %v1003_v45, %v5923_v5  ;;  %v4716_v35 = vld [vmem:[%s6587_s7] ss:$0 sm:$0xff] }
 0x1ed   : > { %v916_v39 = vpop.f32.mrf.mxu0  ;;  %v5156_v40 = vpop.f32.mrf.mxu1 }
 0x1ee   : > { %v1000_v41 = vmul.f32 2.0, %v916_v39  ;;  %v1006_v43 = vsub.f32 %v1002_v37, %v5933_v8  ;;  %v1005_v44 = vsub.f32 %v1001_v38, %v5911_v1 }
 0x1ef   : > { %v1195_v46 = vpop.f32.mrf.mxu1 }
 0x1f0   : > { %v1004_v42 = vsub.f32 %v1000_v41, %v5913_v2 }
 0x1f1   : > { %v5163_v50 = vpop.f32.mrf.mxu1 }
 0x1f2   : > { %5144 = vmatprep.mubr.msk.f32.mxu0 %vm648_vm3, %v1004_v42 }
 0x1f3   : > { %5145 = vmatmul.mubr.msk.f32.vlgmr.msra.gmra.mxu0 %vm648_vm3, %v1005_v44  ;;  %v1270_v52 = vpop.f32.mrf.mxu1 }
 0x1f4   : > { %5165 = vmatpush3.msra.mxu0 %v4724_v20  ;;  %5147 = vmatprep.mubr.msk.f32.mxu0 %vm648_vm3, %v1006_v43 }
 0x1f5   : > { %5166 = vmatprep.subr.mxu0 %v4723_v47 }
 0x1f6   : > { %5167 = vmatpush3.msra.mxu0 %v4723_v47 }
 0x1f7   : > { %5168 = vmatprep.subr.mxu0 %v4722_v48  ;;  %5148 = vmatmul.mubr.msk.f32.gmra.mxu0 %vm648_vm3, %v1007_v49 }
 0x1f8   : > { %5169 = vmatpush3.msra.mxu0 %v4722_v48  ;;  %5172 = vmatprep.mubr.msk.f32.mxu0 %vm1284_vm4, %v1195_v46 }
 0x1f9   : > { %5170 = vmatprep.subr.mxu0 %v4721_v51  ;;  %v5188_v32 = vpop.f32.mrf.mxu1 }
 0x1fa   : > { %5171 = vmatpush3.msra.mxu0 %v4721_v51 }
 0x1fb   : > { %5192 = vmatprep.subr.mxu0 %v5156_v40  ;;  %5173 = vmatmul.mubr.msk.f32.vlgmr.msra.gmra.mxu0 %vm1284_vm4, %v5156_v40  ;;  %v1460_v33 = vpop.f32.mrf.mxu1 }
 0x1fc   : > { %5193 = vmatpush3.msra.mxu0 %v5156_v40  ;;  %5175 = vmatprep.mubr.msk.f32.mxu0 %vm1284_vm4, %v1270_v52 }
 0x1fd   : > { %5194 = vmatprep.subr.mxu0 %v1195_v46 }
 0x1fe   : > { %5195 = vmatpush3.msra.mxu0 %v1195_v46 }
 0x1ff   : > { %5199 = vmatprep.subr.mxu0 %v5163_v50  ;;  %5176 = vmatmul.mubr.msk.f32.gmra.mxu0 %vm1284_vm4, %v5163_v50 }
 0x200   : > { %5196 = vmatprep.mubr.msk.f32.mxu0 %vm483_vm1, %v5915_v3 }
 0x203   : > { %5197 = vmatmul.mubr.msk.f32.vlgmr.msra.gmra.mxu0 %vm483_vm1, %v5921_v4 }
 0x204   : > { %5200 = vmatpush3.msra.mxu0 %v5163_v50  ;;  %5203 = vmatprep.mubr.msk.f32.mxu0 %vm483_vm1, %v5929_v7 }
 0x205   : > { %5201 = vmatprep.subr.mxu0 %v1270_v52 }
 0x206   : > { %5202 = vmatpush3.msra.mxu0 %v1270_v52 }
 0x207   : > { %5204 = vmatmul.mubr.msk.f32.vlgmr.msra.gmra.mxu0 %vm483_vm1, %v5942_v9 }
 0x208   : > { %5224 = vmatprep.mubr.msk.f32.mxu0 %vm483_vm1, %v5915_v3 }
 0x2b3   : > { %v5146_v58 = vpop.f32.mrf.mxu0 }
 0x2b4   : > { %v1111_v60 = vadd.f32 %v5146_v58, %v837_v57 }
 0x2b5   : > { %v1091_v61 = vpop.f32.mrf.mxu0 }
 0x2b6   : > { %v1110_v63 = vadd.f32 %v1091_v61, %v832_v59  ;;  %v6112_v39 = vadd.f32 %v4716_v35, %v1111_v60 }
 0x2b7   : > { %v5149_v0 = vpop.f32.mrf.mxu0 }
 0x2b8   : > { %v1113_v1 = vadd.f32 %v5149_v0, %v847_v62  ;;  %v6114_v43 = vadd.f32 %v4716_v35, %v1110_v63 }
 0x2b9   : > { %v1101_v2 = vpop.f32.mrf.mxu0 }
 0x2ba   : > { %v1112_v5 = vadd.f32 %v1101_v2, %v6037_v34  ;;  %v5191_v34 = vpop.f32.mrf.mxu1  ;;  %v6117_v47 = vadd.f32 %v4716_v35, %v1113_v1 }
 0x2bb   : > { %v5174_v6 = vpop.f32.mrf.mxu0 }
 0x2bc   : > { %v1470_v36 = vpop.f32.mrf.mxu1  ;;  %v1466_v37 = vadd.f32 %v5188_v32, %v5174_v6  ;;  %v6120_v53 = vadd.f32 %v4716_v35, %v1112_v5  ;;  %v4769_v32 = vld [vmem:[%s6586_s6 + $0x40] sm:$0xff] }
 0x2bd   : > { %v1363_v8 = vpop.f32.mrf.mxu0 }
 0x2be   : > { %v1461_v40 = vadd.f32 %v1460_v33, %v1363_v8 }
 0x2bf   : > { %v5177_v10 = vpop.f32.mrf.mxu0 }
 0x2c0   : > { %v1476_v44 = vadd.f32 %v5191_v34, %v5177_v10 }
 0x2c1   : > { %v1373_v11 = vpop.f32.mrf.mxu0 }
 0x2c2   : > { %v1471_v49 = vadd.f32 %v1470_v36, %v1373_v11 }
 0x2c3   : > { %v5198_v12 = vpop.f32.mrf.mxu0 }
 0x2c4   : > { %v1630_v13 = vmul.f32 2.0, %v5198_v12 }
 0x2c5   : > { %v1545_v14 = vpop.f32.mrf.mxu0 }
 0x2c6   : > { %v1629_v19 = vmul.f32 2.0, %v1545_v14  ;;  %v1634_v22 = vsub.f32 %v1630_v13, %v5966_v15 }
 0x2c7   : > { %v5205_v20 = vpop.f32.mrf.mxu0 }
 0x2c8   : > { %v1633_v21 = vsub.f32 %v1629_v19, %v5971_v16  ;;  %v1632_v23 = vmul.f32 2.0, %v5205_v20 }
 0x2c9   : > { %v1620_v24 = vpop.f32.mrf.mxu0 }
 0x2ca   : > { %v1631_v25 = vmul.f32 2.0, %v1620_v24  ;;  %5214 = vmatprep.mubr.msk.f32.mxu1 %vm1284_vm4, %v1633_v21  ;;  %v1636_v27 = vsub.f32 %v1632_v23, %v5979_v17  ;;  %v1778_v21 = vld [vmem:[%s6586_s6 + $0x18] sm:$0xff]  ;;  %v1776_v23 = vld [vmem:[%s6586_s6 + $0x8] sm:$0xff]  ;;  %v1775_v24 = vld [vmem:[%s6586_s6] sm:$0xff] }
 0x2cb   : > { %5215 = vmatmul.mubr.msk.f32.vlgmr.msra.gmra.mxu1 %vm1284_vm4, %v1634_v22  ;;  %v1777_v22 = vld [vmem:[%s6586_s6 + $0x10] sm:$0xff] }
 0x2cc   : > { %v1635_v26 = vsub.f32 %v1631_v25, %v5985_v18  ;;  %5235 = vmatpush3.msra.mxu1 %v4756_v28 }
 0x2cd   : > { %5236 = vmatprep.subr.mxu1 %v4755_v29 }
 0x2ce   : > { %5217 = vmatprep.mubr.msk.f32.mxu1 %vm1284_vm4, %v1635_v26  ;;  %5237 = vmatpush3.msra.mxu1 %v4755_v29  ;;  %v4772_v29 = vld [vmem:[%s6586_s6 + $0x58] sm:$0xff] }
 0x2cf   : > { %5218 = vmatmul.mubr.msk.f32.gmra.mxu1 %vm1284_vm4, %v1636_v27  ;;  %5238 = vmatprep.subr.mxu1 %v4754_v30 }
 0x2d0   : > { %5239 = vmatpush3.msra.mxu1 %v4754_v30  ;;  %v4771_v30 = vld [vmem:[%s6586_s6 + $0x50] sm:$0xff] }
 0x2d1   : > { %5240 = vmatprep.subr.mxu1 %v4753_v31 }
 0x2d2   : > { %5241 = vmatpush3.msra.mxu1 %v4753_v31  ;;  %v4770_v31 = vld [vmem:[%s6586_s6 + $0x48] sm:$0xff] }
 0x38b   : > { %v5216_v38 = vpop.f32.mrf.mxu1 }
 0x38c   : > { %v1740_v41 = vadd.f32 %v5216_v38, %v1466_v37 }
 0x38d   : > { %v1720_v42 = vpop.f32.mrf.mxu1 }
 0x38e   : > { %v1744_v45 = vadd.f32 %v1740_v41, %v6112_v39  ;;  %v1739_v46 = vadd.f32 %v1720_v42, %v1461_v40 }
 0x38f   : > { %v5219_v48 = vpop.f32.mrf.mxu1 }
 0x390   : > { %v4746_v50 = vmul.f32 -1.442695, %v1744_v45  ;;  %v1743_v51 = vadd.f32 %v1739_v46, %v6114_v43  ;;  %v1742_v52 = vadd.f32 %v5219_v48, %v1476_v44 }
 0x391   : > { %v1730_v54 = vpop.f32.mrf.mxu1 }
 0x392   : > { %5561 = vpow2.f32 %v4746_v50  ;;  %v4745_v55 = vmul.f32 -1.442695, %v1743_v51  ;;  %v1746_v56 = vadd.f32 %v1742_v52, %v6117_v47  ;;  %v1741_v57 = vadd.f32 %v1730_v54, %v1471_v49 }
 0x394   : > { %5563 = vpow2.f32 %v4745_v55  ;;  %v4748_v58 = vmul.f32 -1.442695, %v1746_v56  ;;  %v1745_v59 = vadd.f32 %v1741_v57, %v6120_v53 }
 0x396   : > { %5565 = vpow2.f32 %v4748_v58  ;;  %v4747_v60 = vmul.f32 -1.442695, %v1745_v59 }
 0x398   : > { %5567 = vpow2.f32 %v4747_v60 }
 0x39f   : > { %v5562_v61 = vpop.eup %5561 }
 0x3a0   : > { %v1760_v62 = vadd.f32 1.0, %v5562_v61 }
 0x3a1   : > { %v5564_v63 = vpop.eup %5563 }
 0x3a2   : > { %5569 = vrcp.f32 %v1760_v62  ;;  %v1759_v0 = vadd.f32 1.0, %v5564_v63 }
 0x3a3   : > { %v5566_v1 = vpop.eup %5565 }
 0x3a4   : > { %5571 = vrcp.f32 %v1759_v0  ;;  %v1762_v2 = vadd.f32 1.0, %v5566_v1 }
 0x3a5   : > { %v5568_v5 = vpop.eup %5567 }
 0x3a6   : > { %5573 = vrcp.f32 %v1762_v2  ;;  %v1761_v6 = vadd.f32 1.0, %v5568_v5 }
 0x3a8   : > { %5575 = vrcp.f32 %v1761_v6 }
 0x3af   : > { %v6124_v8 = vpop.eup %5569 }
 0x3b0   : > { %v6128_v10 = vmul.f32 %v6124_v8, %v5966_v15 }
 0x3b1   : > { %v6130_v11 = vpop.eup %5571 }
 0x3b2   : > { %5220 = vmatprep.subr.mxu0 %v6128_v10  ;;  %v6135_v12 = vmul.f32 %v6130_v11, %v5971_v16 }
 0x3b3   : > { %v6137_v13 = vpop.eup %5573  ;;  %5221 = vmatpush3.msra.mxu0 %v6128_v10 }
 0x3b4   : > { %5222 = vmatprep.subr.mxu0 %v6135_v12  ;;  %v6143_v14 = vmul.f32 %v6137_v13, %v5979_v17 }
 0x3b5   : > { %v6145_v19 = vpop.eup %5575  ;;  %5223 = vmatpush3.msra.mxu0 %v6135_v12 }
 0x3b6   : > { %5225 = vmatmul.mubr.msk.f32.vlgmr.msra.gmra.mxu0 %vm483_vm1, %v5921_v4  ;;  %5227 = vmatprep.subr.mxu0 %v6143_v14  ;;  %v6153_v20 = vmul.f32 %v6145_v19, %v5985_v18 }
 0x3b7   : > { %5228 = vmatpush3.msra.mxu0 %v6143_v14  ;;  %5231 = vmatprep.mubr.msk.f32.mxu0 %vm483_vm1, %v5929_v7 }
 0x3b8   : > { %5229 = vmatprep.subr.mxu0 %v6153_v20 }
 0x3b9   : > { %5230 = vmatpush3.msra.mxu0 %v6153_v20 }
 0x3ba   : > { %5232 = vmatmul.mubr.msk.f32.vlgmr.msra.gmra.mxu0 %vm483_vm1, %v5942_v9  ;;  %5248 = vmatprep.subr.mxu0 %v1778_v21 }
 0x3bb   : > { %5249 = vmatpush3.msra.mxu0 %v1778_v21  ;;  %5256 = vmatprep.mubr.msk.f32.mxu0 %vm1284_vm4, %v6135_v12 }
 0x3bc   : > { %5250 = vmatprep.subr.mxu0 %v1777_v22 }
 0x3bd   : > { %5251 = vmatpush3.msra.mxu0 %v1777_v22 }
 0x3be   : > { %5252 = vmatprep.subr.mxu0 %v1776_v23 }
 0x3bf   : > { %5253 = vmatpush3.msra.mxu0 %v1776_v23 }
 0x3c0   : > { %5254 = vmatprep.subr.mxu0 %v1775_v24 }
 0x3c1   : > { %5255 = vmatpush3.msra.mxu0 %v1775_v24  ;;  %v2433_v24 = vsub.f32 1.0, %v6124_v8 }
 0x3c2   : > { %5257 = vmatmul.mubr.msk.f32.vlgmr.msra.gmra.mxu0 %vm1284_vm4, %v6128_v10  ;;  %5276 = vmatprep.subr.mxu0 %v4772_v29 }
 0x3c3   : > { %5259 = vmatprep.mubr.msk.f32.mxu0 %vm1284_vm4, %v6153_v20  ;;  %5277 = vmatpush3.msra.mxu0 %v4772_v29 }
 0x3c4   : > { %5278 = vmatprep.subr.mxu0 %v4771_v30 }
 0x3c5   : > { %5279 = vmatpush3.msra.mxu0 %v4771_v30 }
 0x3c6   : > { %5260 = vmatmul.mubr.msk.f32.gmra.mxu0 %vm1284_vm4, %v6143_v14  ;;  %5280 = vmatprep.subr.mxu0 %v4770_v31 }
 0x3c7   : > { %5281 = vmatpush3.msra.mxu0 %v4770_v31 }
 0x3c8   : > { %5282 = vmatprep.subr.mxu0 %v4769_v32 }
 0x3c9   : > { %5283 = vmatpush3.msra.mxu0 %v4769_v32 }
 0x476   : > { %v5226_v25 = vpop.f32.mrf.mxu0 }
 0x477   : > { %5262 = vmatprep.subr.mxu1 %v5226_v25 }
 0x478   : > { %v1845_v26 = vpop.f32.mrf.mxu0 }
 0x479   : > { %5242 = vmatprep.mubr.msk.f32.mxu1 %vm1284_vm4, %v1845_v26 }
 0x47a   : > { %v5233_v27 = vpop.f32.mrf.mxu0  ;;  %5243 = vmatmul.mubr.msk.f32.vlgmr.msra.gmra.mxu1 %vm1284_vm4, %v5226_v25 }
 0x47b   : > { %5263 = vmatpush3.msra.mxu1 %v5226_v25 }
 0x47c   : > { %5264 = vmatprep.subr.mxu1 %v1845_v26  ;;  %v1920_v28 = vpop.f32.mrf.mxu0 }
 0x47d   : > { %5265 = vmatpush3.msra.mxu1 %v1845_v26  ;;  %5245 = vmatprep.mubr.msk.f32.mxu1 %vm1284_vm4, %v1920_v28 }
 0x47e   : > { %5269 = vmatprep.subr.mxu1 %v5233_v27  ;;  %5246 = vmatmul.mubr.msk.f32.gmra.mxu1 %vm1284_vm4, %v5233_v27 }
 0x47f   : > { %5266 = vmatprep.mubr.msk.f32.mxu1 %vm483_vm1, %v5915_v3 }
 0x482   : > { %5267 = vmatmul.mubr.msk.f32.vlgmr.msra.gmra.mxu1 %vm483_vm1, %v5921_v4  ;;  %v5258_v52 = vpop.f32.mrf.mxu0 }
 0x483   : > { %5270 = vmatpush3.msra.mxu1 %v5233_v27  ;;  %5273 = vmatprep.mubr.msk.f32.mxu1 %vm483_vm1, %v5929_v7 }
 0x484   : > { %5271 = vmatprep.subr.mxu1 %v1920_v28  ;;  %v2109_v54 = vpop.f32.mrf.mxu0 }
 0x485   : > { %5272 = vmatpush3.msra.mxu1 %v1920_v28  ;;  %v2432_v28 = vsub.f32 1.0, %v6130_v11 }
 0x486   : > { %5274 = vmatmul.mubr.msk.f32.vlgmr.msra.gmra.mxu1 %vm483_vm1, %v5942_v9  ;;  %v5261_v55 = vpop.f32.mrf.mxu0 }
 0x487   : > { %5294 = vmatprep.mubr.msk.f32.mxu1 %vm483_vm1, %v5915_v3 }
 0x488   : > { %v2119_v56 = vpop.f32.mrf.mxu0 }
 0x53a   : > { %v5244_v33 = vpop.f32.mrf.mxu1 }
 0x53b   : > { %v2115_v57 = vadd.f32 %v5258_v52, %v5244_v33  ;;  %v2487_v52 = vld [vmem:[%s6588_s8 + $0x10] sm:$0xff] }
 0x53c   : > { %v2012_v34 = vpop.f32.mrf.mxu1 }
 0x53d   : > { %v2110_v61 = vadd.f32 %v2109_v54, %v2012_v34  ;;  %v2435_v34 = vsub.f32 1.0, %v6137_v13  ;;  %v2486_v54 = vld [vmem:[%s6588_s8 + $0x8] sm:$0xff] }
 0x53e   : > { %v5247_v35 = vpop.f32.mrf.mxu1 }
 0x53f   : > { %v2125_v62 = vadd.f32 %v5261_v55, %v5247_v35  ;;  %v2485_v55 = vld [vmem:[%s6588_s8] sm:$0xff] }
 0x540   : > { %v2022_v36 = vpop.f32.mrf.mxu1 }
 0x541   : > { %v2120_v5 = vadd.f32 %v2119_v56, %v2022_v36  ;;  %v4781_v56 = vld [vmem:[%s6588_s8 + $0x20] sm:$0xff] }
 0x542   : > { %v5268_v37 = vpop.f32.mrf.mxu1 }
 0x543   : > { %v2279_v38 = vmul.f32 2.0, %v5268_v37 }
 0x544   : > { %v2194_v40 = vpop.f32.mrf.mxu1 }
 0x545   : > { %v2278_v41 = vmul.f32 2.0, %v2194_v40  ;;  %v2283_v45 = vsub.f32 %v2279_v38, %v6128_v10  ;;  %v2434_v40 = vsub.f32 1.0, %v6145_v19 }
 0x546   : > { %v5275_v42 = vpop.f32.mrf.mxu1 }
 0x547   : > { %v2282_v44 = vsub.f32 %v2278_v41, %v6135_v12  ;;  %v2281_v46 = vmul.f32 2.0, %v5275_v42 }
 0x548   : > { %v2269_v48 = vpop.f32.mrf.mxu1 }
 0x549   : > { %v2280_v49 = vmul.f32 2.0, %v2269_v48  ;;  %5284 = vmatprep.mubr.msk.f32.mxu0 %vm1284_vm4, %v2282_v44  ;;  %v2285_v51 = vsub.f32 %v2281_v46, %v6143_v14 }
 0x54a   : > { %5285 = vmatmul.mubr.msk.f32.vlgmr.msra.gmra.mxu0 %vm1284_vm4, %v2283_v45  ;;  %v4783_v45 = vld [vmem:[%s6588_s8 + $0x30] sm:$0xff] }
 0x54b   : > { %v2284_v50 = vsub.f32 %v2280_v49, %v6153_v20 }
 0x54d   : > { %5287 = vmatprep.mubr.msk.f32.mxu0 %vm1284_vm4, %v2284_v50 }
 0x54e   : > { %5288 = vmatmul.mubr.msk.f32.gmra.mxu0 %vm1284_vm4, %v2285_v51  ;;  %v2488_v51 = vld [vmem:[%s6588_s8 + $0x18] sm:$0xff] }
 0x60a   : > { %v5286_v58 = vpop.f32.mrf.mxu0 }
 0x60b   : > { %v2389_v59 = vadd.f32 %v5286_v58, %v2115_v57 }
 0x60c   : > { %v2369_v60 = vpop.f32.mrf.mxu0 }
 0x60d   : > { %2398 = vrot.lane.b32.xlu0 %v2389_v59, %s5751_s17  ;;  %v2388_v0 = vadd.f32 %v2369_v60, %v2110_v61  ;;  %v6320_v61 = vld [vmem:[#allocation2 + $0x28] sm:$0xff] }
 0x60e   : > { %v5289_v63 = vpop.f32.mrf.mxu0 }
 0x60f   : > { %v2391_v1 = vadd.f32 %v5289_v63, %v2125_v62  ;;  %v6322_v62 = vld [vmem:[#allocation2 + $0x20] sm:$0xff]  ;;  %v6330_v63 = vld [vmem:[#allocation2 + $0x38] sm:$0xff] }
 0x610   : > { %v2379_v2 = vpop.f32.mrf.mxu0 }
 0x611   : > { %2396 = vrot.lane.b32.xlu0 %v2388_v0, %s5751_s17  ;;  %2402 = vrot.lane.b32.xlu1 %v2391_v1, %s5751_s17  ;;  %v2390_v6 = vadd.f32 %v2379_v2, %v2120_v5  ;;  %v6334_v0 = vld [vmem:[#allocation2 + $0x30] sm:$0xff]  ;;  %v3267_v1 = vld [vmem:[#allocation9 + $0x38] sm:$0xff] }
 0x612   : > { %v3112_v2 = vld [vmem:[#allocation9 + $0x18] sm:$0xff]  ;;  %v3111_v5 = vld [vmem:[#allocation9 + $0x10] sm:$0xff] }
 0x615   : > { %2418 = vrot.lane.b32.xlu0 %v5966_v15, %s5752_s20  ;;  %2400 = vrot.lane.b32.xlu1 %v2390_v6, %s5751_s17  ;;  %v3110_v6 = vld [vmem:[#allocation9 + $0x8] sm:$0xff] }
 0x619   : > { %2416 = vrot.lane.b32.xlu0 %v5971_v16, %s5752_s20 }
 0x61d   : > { %2422 = vrot.lane.b32.xlu0 %v5979_v17, %s5752_s20 }
 0x621   : > { %2420 = vrot.lane.b32.xlu0 %v5985_v18, %s5752_s20 }
 0x67f   : > { %v2399_v10 = vpop.permute.xlu0 %2398 }
 0x680   : > { %v2409_v12 = vadd.f32 %v2399_v10, %v6112_v39  ;;  %v3109_v10 = vld [vmem:[#allocation9] sm:$0xff] }
 0x682   : > { %5577 = vtanh.f32 %v2409_v12 }
 0x683   : > { %v2397_v14 = vpop.permute.xlu0 %2396  ;;  %v2403_v20 = vpop.permute.xlu1 %2402 }
 0x684   : > { %v2408_v21 = vadd.f32 %v2397_v14, %v6114_v43  ;;  %v2411_v15 = vadd.f32 %v2403_v20, %v6117_v47 }
 0x686   : > { %5579 = vtanh.f32 %v2408_v21 }
 0x687   : > { %v2401_v22 = vpop.permute.xlu1 %2400  ;;  %5581 = vtanh.f32 %v2411_v15  ;;  %v2419_v43 = vpop.permute.xlu0 %2418 }
 0x688   : > { %v2410_v16 = vadd.f32 %v2401_v22, %v6120_v53  ;;  %v2429_v53 = vmul.f32 %v6124_v8, %v2419_v43 }
 0x68a   : > { %5583 = vtanh.f32 %v2410_v16 }
 0x68b   : > { %v2417_v47 = vpop.permute.xlu0 %2416 }
 0x68c   : > { %v2428_v31 = vmul.f32 %v6130_v11, %v2417_v47 }
 0x68f   : > { %v5578_v17 = vpop.eup %5577  ;;  %v2423_v29 = vpop.permute.xlu0 %2422 }
 0x690   : > { %2442 = vrot.lane.b32.xlu1 %v5578_v17, %s5753_s21  ;;  %v2431_v36 = vmul.f32 %v6137_v13, %v2423_v29  ;;  %v4784_v13 = vld [vmem:[%s6588_s8 + $0x38] sm:$0xff] }
 0x691   : > { %5304 = vmatprep.subr.mxu0 %v4784_v13 }
 0x692   : > { %5305 = vmatpush3.msra.mxu0 %v4784_v13 }
 0x693   : > { %v5580_v18 = vpop.eup %5579  ;;  %v2421_v8 = vpop.permute.xlu0 %2420  ;;  %5306 = vmatprep.subr.mxu0 %v4783_v45 }
 0x694   : > { %2440 = vrot.lane.b32.xlu1 %v5580_v18, %s5753_s21  ;;  %v5582_v39 = vpop.eup %5581  ;;  %v2430_v42 = vmul.f32 %v6145_v19, %v2421_v8  ;;  %v4782_v19 = vld [vmem:[%s6588_s8 + $0x28] sm:$0xff]  ;;  %5307 = vmatpush3.msra.mxu0 %v4783_v45  ;;  %v3623_v8 = vld [vmem:[#allocation9 + $0x50] sm:$0xff] }
 0x695   : > { %5308 = vmatprep.subr.mxu0 %v4782_v19 }
 0x696   : > { %5309 = vmatpush3.msra.mxu0 %v4782_v19 }
 0x697   : > { %v5584_v23 = vpop.eup %5583  ;;  %5310 = vmatprep.subr.mxu0 %v4781_v56 }
 0x698   : > { %2446 = vrot.lane.b32.xlu1 %v5582_v39, %s5753_s21  ;;  %5311 = vmatpush3.msra.mxu0 %v4781_v56 }
 0x69c   : > { %2444 = vrot.lane.b32.xlu1 %v5584_v23, %s5753_s21 }
 0x702   : > { %v2443_v25 = vpop.permute.xlu1 %2442 }
 0x703   : > { %v2453_v26 = vmul.f32 %v2443_v25, %v2433_v24  ;;  %v3266_v25 = vld [vmem:[#allocation9 + $0x30] sm:$0xff] }
 0x705   : > { %v2457_v27 = vadd.f32 %v2453_v26, %v2429_v53 }
 0x706   : > { %v2441_v30 = vpop.permute.xlu1 %2440 }
 0x707   : > { %v2452_v32 = vmul.f32 %v2441_v30, %v2432_v28  ;;  %2466 = vrot.lane.b32.xlu0 %v2457_v27, %s5753_s21  ;;  %v3265_v27 = vld [vmem:[#allocation9 + $0x28] sm:$0xff]  ;;  %v3264_v30 = vld [vmem:[#allocation9 + $0x20] sm:$0xff] }
 0x709   : > { %v2456_v33 = vadd.f32 %v2452_v32, %v2428_v31 }
 0x70a   : > { %v2447_v35 = vpop.permute.xlu1 %2446 }
 0x70b   : > { %v2455_v37 = vmul.f32 %v2447_v35, %v2435_v34  ;;  %2464 = vrot.lane.b32.xlu1 %v2456_v33, %s5753_s21  ;;  %v6386_v33 = vld [vmem:[#allocation7] sm:$0xff]  ;;  %v6390_v34 = vld [vmem:[#allocation7 + $0x8] sm:$0xff]  ;;  %v6394_v35 = vld [vmem:[#allocation7 + $0x10] sm:$0xff] }
 0x70d   : > { %v2459_v38 = vadd.f32 %v2455_v37, %v2431_v36  ;;  %v6398_v36 = vld [vmem:[#allocation7 + $0x18] sm:$0xff] }
 0x70e   : > { %v2445_v41 = vpop.permute.xlu1 %2444  ;;  %v3624_v37 = vld [vmem:[#allocation9 + $0x58] sm:$0xff] }
 0x70f   : > { %v2454_v11 = vmul.f32 %v2445_v41, %v2434_v40  ;;  %2470 = vrot.lane.b32.xlu0 %v2459_v38, %s5753_s21  ;;  %v3622_v38 = vld [vmem:[#allocation9 + $0x48] sm:$0xff]  ;;  %v3621_v40 = vld [vmem:[#allocation9 + $0x40] sm:$0xff] }
 0x711   : > { %v2458_v44 = vadd.f32 %v2454_v11, %v2430_v42 }
 0x713   : > { %2468 = vrot.lane.b32.xlu1 %v2458_v44, %s5753_s21 }
 0x779   : > { %v6257_v46 = vpop.permute.xlu0 %2466 }
 0x77a   : > { %2477 = vst.msk [vmem:[#allocation2 + $0x8] sm:$0xff] %vm1284_vm4, %v6257_v46  ;;  %5290 = vmatprep.subr.mxu1 %v6257_v46 }
 0x77b   : > { %5291 = vmatpush3.msra.mxu1 %v6257_v46 }
 0x77d   : > { %v6263_v48 = vpop.permute.xlu1 %2464 }
 0x77e   : > { %2476 = vst.msk [vmem:[#allocation2] sm:$0xff] %vm1284_vm4, %v6263_v48  ;;  %5292 = vmatprep.subr.mxu1 %v6263_v48 }
 0x77f   : > { %5293 = vmatpush3.msra.mxu1 %v6263_v48 }
 0x780   : > { %5295 = vmatmul.mubr.msk.f32.vlgmr.msra.gmra.mxu1 %vm483_vm1, %v5921_v4 }
 0x781   : > { %v6271_v49 = vpop.permute.xlu0 %2470  ;;  %5301 = vmatprep.mubr.msk.f32.mxu1 %vm483_vm1, %v5929_v7 }
 0x782   : > { %2479 = vst.msk [vmem:[#allocation2 + $0x18] sm:$0xff] %vm1284_vm4, %v6271_v49  ;;  %5297 = vmatprep.subr.mxu1 %v6271_v49 }
 0x783   : > { %5298 = vmatpush3.msra.mxu1 %v6271_v49 }
 0x785   : > { %v6279_v50 = vpop.permute.xlu1 %2468 }
 0x786   : > { %2478 = vst.msk [vmem:[#allocation2 + $0x10] sm:$0xff] %vm1284_vm4, %v6279_v50  ;;  %5299 = vmatprep.subr.mxu1 %v6279_v50 }
 0x787   : > { %5300 = vmatpush3.msra.mxu1 %v6279_v50 }
 0x788   : > { %5302 = vmatmul.mubr.msk.f32.vlgmr.msra.gmra.mxu1 %vm483_vm1, %v5942_v9  ;;  %5318 = vmatprep.subr.mxu1 %v2488_v51 }
 0x789   : > { %5319 = vmatpush3.msra.mxu1 %v2488_v51  ;;  %5326 = vmatprep.mubr.msk.f32.mxu1 %vm1284_vm4, %v6263_v48 }
 0x78a   : > { %5320 = vmatprep.subr.mxu1 %v2487_v52 }
 0x78b   : > { %5321 = vmatpush3.msra.mxu1 %v2487_v52 }
 0x78c   : > { %5322 = vmatprep.subr.mxu1 %v2486_v54 }
 0x78d   : > { %5323 = vmatpush3.msra.mxu1 %v2486_v54 }
 0x78e   : > { %5324 = vmatprep.subr.mxu1 %v2485_v55 }
 0x78f   : > { %5325 = vmatpush3.msra.mxu1 %v2485_v55 }
 0x790   : > { %5327 = vmatmul.mubr.msk.f32.vlgmr.msra.gmra.mxu1 %vm1284_vm4, %v6257_v46 }
 0x791   : > { %5329 = vmatprep.mubr.msk.f32.mxu1 %vm1284_vm4, %v6279_v50 }
 0x794   : > { %5330 = vmatmul.mubr.msk.f32.gmra.mxu1 %vm1284_vm4, %v6271_v49 }
 0x840   : > { %v5296_v57 = vpop.f32.mrf.mxu1 }
 0x841   : > { %5332 = vmatprep.subr.mxu0 %v5296_v57 }
 0x842   : > { %v2555_v58 = vpop.f32.mrf.mxu1 }
 0x843   : > { %5312 = vmatprep.mubr.msk.f32.mxu0 %vm1284_vm4, %v2555_v58 }
 0x844   : > { %5313 = vmatmul.mubr.msk.f32.vlgmr.msra.gmra.mxu0 %vm1284_vm4, %v5296_v57 }
 0x845   : > { %5333 = vmatpush3.msra.mxu0 %v5296_v57 }
 0x846   : > { %5334 = vmatprep.subr.mxu0 %v2555_v58 }
 0x847   : > { %5335 = vmatpush3.msra.mxu0 %v2555_v58 }
 0x848   : > { %v5303_v59 = vpop.f32.mrf.mxu1 }
 0x849   : > { %5339 = vmatprep.subr.mxu0 %v5303_v59 }
 0x84a   : > { %v2630_v60 = vpop.f32.mrf.mxu1 }
 0x84b   : > { %5315 = vmatprep.mubr.msk.f32.mxu0 %vm1284_vm4, %v2630_v60 }
 0x84c   : > { %5316 = vmatmul.mubr.msk.f32.gmra.mxu0 %vm1284_vm4, %v5303_v59 }
 0x84d   : > { %5336 = vmatprep.mubr.msk.f32.mxu0 %vm483_vm1, %v5915_v3 }
 0x850   : > { %5337 = vmatmul.mubr.msk.f32.vlgmr.msra.gmra.mxu0 %vm483_vm1, %v5921_v4  ;;  %v5328_v41 = vpop.f32.mrf.mxu1 }
 0x851   : > { %5340 = vmatpush3.msra.mxu0 %v5303_v59  ;;  %5343 = vmatprep.mubr.msk.f32.mxu0 %vm483_vm1, %v5929_v7 }
 0x852   : > { %5341 = vmatprep.subr.mxu0 %v2630_v60  ;;  %v2815_v42 = vpop.f32.mrf.mxu1 }
 0x853   : > { %5342 = vmatpush3.msra.mxu0 %v2630_v60 }
 0x854   : > { %5344 = vmatmul.mubr.msk.f32.vlgmr.msra.gmra.mxu0 %vm483_vm1, %v5942_v9  ;;  %5360 = vmatprep.subr.mxu0 %v6320_v61  ;;  %v5331_v11 = vpop.f32.mrf.mxu1 }
 0x855   : > { %5361 = vmatpush3.msra.mxu0 %v6320_v61  ;;  %5364 = vmatprep.mubr.msk.f32.mxu0 %vm483_vm1, %v5915_v3  ;;  %v4800_v3 = vld [vmem:[%s6588_s8 + $0x58] sm:$0xff] }
 0x856   : > { %5362 = vmatprep.subr.mxu0 %v6322_v62  ;;  %5346 = vmatprep.subr.mxu1 %v4800_v3  ;;  %v2825_v44 = vpop.f32.mrf.mxu1 }
 0x857   : > { %5363 = vmatpush3.msra.mxu0 %v6322_v62  ;;  %5347 = vmatpush3.msra.mxu1 %v4800_v3 }
 0x858   : > { %5365 = vmatmul.mubr.msk.f32.vlgmr.msra.gmra.mxu0 %vm483_vm1, %v5921_v4  ;;  %5367 = vmatprep.subr.mxu0 %v6330_v63  ;;  %v4799_v4 = vld [vmem:[%s6588_s8 + $0x50] sm:$0xff] }
 0x859   : > { %5368 = vmatpush3.msra.mxu0 %v6330_v63  ;;  %5371 = vmatprep.mubr.msk.f32.mxu0 %vm483_vm1, %v5929_v7  ;;  %v4798_v7 = vld [vmem:[%s6588_s8 + $0x48] sm:$0xff] }
 0x85a   : > { %5369 = vmatprep.subr.mxu0 %v6334_v0  ;;  %5348 = vmatprep.subr.mxu1 %v4799_v4 }
 0x85b   : > { %5370 = vmatpush3.msra.mxu0 %v6334_v0  ;;  %5349 = vmatpush3.msra.mxu1 %v4799_v4 }
 0x85c   : > { %5372 = vmatmul.mubr.msk.f32.vlgmr.msra.gmra.mxu0 %vm483_vm1, %v5942_v9  ;;  %5350 = vmatprep.subr.mxu1 %v4798_v7  ;;  %v4797_v9 = vld [vmem:[%s6588_s8 + $0x40] sm:$0xff] }
 0x85d   : > { %5396 = vmatprep.mubr.msk.f32.mxu0 %vm1284_vm4, %v6322_v62  ;;  %5351 = vmatpush3.msra.mxu1 %v4798_v7 }
 0x85e   : > { %5352 = vmatprep.subr.mxu1 %v4797_v9  ;;  %5388 = vmatprep.subr.mxu0 %v3112_v2 }
 0x85f   : > { %5353 = vmatpush3.msra.mxu1 %v4797_v9  ;;  %5389 = vmatpush3.msra.mxu0 %v3112_v2 }
 0x860   : > { %5374 = vmatprep.subr.mxu1 %v3267_v1  ;;  %5390 = vmatprep.subr.mxu0 %v3111_v5 }
 0x861   : > { %5391 = vmatpush3.msra.mxu0 %v3111_v5 }
 0x862   : > { %5392 = vmatprep.subr.mxu0 %v3110_v6 }
 0x863   : > { %5393 = vmatpush3.msra.mxu0 %v3110_v6 }
 0x864   : > { %5394 = vmatprep.subr.mxu0 %v3109_v10 }
 0x865   : > { %5395 = vmatpush3.msra.mxu0 %v3109_v10 }
 0x866   : > { %5397 = vmatmul.mubr.msk.f32.vlgmr.msra.gmra.mxu0 %vm1284_vm4, %v6320_v61  ;;  %5416 = vmatprep.subr.mxu0 %v3624_v37 }
 0x867   : > { %5399 = vmatprep.mubr.msk.f32.mxu0 %vm1284_vm4, %v6334_v0  ;;  %5417 = vmatpush3.msra.mxu0 %v3624_v37 }
 0x868   : > { %5418 = vmatprep.subr.mxu0 %v3623_v8 }
 0x869   : > { %5419 = vmatpush3.msra.mxu0 %v3623_v8 }
 0x86a   : > { %5400 = vmatmul.mubr.msk.f32.gmra.mxu0 %vm1284_vm4, %v6330_v63  ;;  %5420 = vmatprep.subr.mxu0 %v3622_v38 }
 0x86b   : > { %5421 = vmatpush3.msra.mxu0 %v3622_v38 }
 0x86c   : > { %5422 = vmatprep.subr.mxu0 %v3621_v40 }
 0x86d   : > { %5423 = vmatpush3.msra.mxu0 %v3621_v40 }
 0x904   : > { %v6366_v12 = vpop.f32.mrf.mxu0 }
 0x905   : > { %v2821_v13 = vadd.f32 %v5328_v41, %v6366_v12 }
 0x906   : > { %v6368_v14 = vpop.f32.mrf.mxu0 }
 0x907   : > { %v2816_v19 = vadd.f32 %v2815_v42, %v6368_v14 }
 0x90c   : > { %v6370_v20 = vpop.f32.mrf.mxu0 }
 0x90e   : > { %v6372_v21 = vpop.f32.mrf.mxu0 }
 0x90f   : > { %v2826_v52 = vadd.f32 %v2825_v44, %v6372_v21  ;;  %v3916_v21 = vld [vmem:[#allocation11 + $0x38] sm:$0xff] }
 0x910   : > { %v5338_v15 = vpop.f32.mrf.mxu0  ;;  %5444 = vmatprep.subr.mxu0 %v3916_v21 }
 0x911   : > { %v2985_v22 = vmul.f32 2.0, %v5338_v15  ;;  %v3915_v15 = vld [vmem:[#allocation11 + $0x30] sm:$0xff] }
 0x912   : > { %v2900_v16 = vpop.f32.mrf.mxu0 }
 0x913   : > { %v2984_v17 = vmul.f32 2.0, %v2900_v16  ;;  %v2989_v23 = vsub.f32 %v2985_v22, %v6257_v46  ;;  %v3914_v22 = vld [vmem:[#allocation11 + $0x28] sm:$0xff] }
 0x914   : > { %v5345_v18 = vpop.f32.mrf.mxu0 }
 0x915   : > { %v2988_v39 = vsub.f32 %v2984_v17, %v6263_v48  ;;  %v2987_v43 = vmul.f32 2.0, %v5345_v18 }
 0x916   : > { %v2975_v47 = vpop.f32.mrf.mxu0 }
 0x917   : > { %v2986_v24 = vmul.f32 2.0, %v2975_v47  ;;  %5354 = vmatprep.mubr.msk.f32.mxu1 %vm1284_vm4, %v2988_v39  ;;  %v2991_v28 = vsub.f32 %v2987_v43, %v6271_v49  ;;  %v2831_v49 = vadd.f32 %v5331_v11, %v6370_v20  ;;  %v4805_v39 = vld [vmem:[%s6591_s11] ss:$0 sm:$0xff] }
 0x918   : > { %5355 = vmatmul.mubr.msk.f32.vlgmr.msra.gmra.mxu1 %vm1284_vm4, %v2989_v23  ;;  %v5366_v53 = vpop.f32.mrf.mxu0 }
 0x919   : > { %v2990_v26 = vsub.f32 %v2986_v24, %v6279_v50  ;;  %5375 = vmatpush3.msra.mxu1 %v3267_v1 }
 0x91a   : > { %5376 = vmatprep.subr.mxu1 %v3266_v25  ;;  %v3179_v29 = vpop.f32.mrf.mxu0 }
 0x91b   : > { %5377 = vmatpush3.msra.mxu1 %v3266_v25  ;;  %5357 = vmatprep.mubr.msk.f32.mxu1 %vm1284_vm4, %v2990_v26 }
 0x91c   : > { %5378 = vmatprep.subr.mxu1 %v3265_v27  ;;  %5358 = vmatmul.mubr.msk.f32.gmra.mxu1 %vm1284_vm4, %v2991_v28  ;;  %v5373_v31 = vpop.f32.mrf.mxu0 }
 0x91d   : > { %5379 = vmatpush3.msra.mxu1 %v3265_v27  ;;  %5382 = vmatprep.mubr.msk.f32.mxu1 %vm1284_vm4, %v3179_v29 }
 0x91e   : > { %5380 = vmatprep.subr.mxu1 %v3264_v30  ;;  %v3254_v32 = vpop.f32.mrf.mxu0 }
 0x91f   : > { %5381 = vmatpush3.msra.mxu1 %v3264_v30 }
 0x920   : > { %5402 = vmatprep.subr.mxu1 %v5366_v53  ;;  %5383 = vmatmul.mubr.msk.f32.vlgmr.msra.gmra.mxu1 %vm1284_vm4, %v5366_v53 }
 0x921   : > { %5403 = vmatpush3.msra.mxu1 %v5366_v53  ;;  %5385 = vmatprep.mubr.msk.f32.mxu1 %vm1284_vm4, %v3254_v32 }
 0x922   : > { %5404 = vmatprep.subr.mxu1 %v3179_v29 }
 0x923   : > { %5405 = vmatpush3.msra.mxu1 %v3179_v29 }
 0x924   : > { %5409 = vmatprep.subr.mxu1 %v5373_v31  ;;  %5386 = vmatmul.mubr.msk.f32.gmra.mxu1 %vm1284_vm4, %v5373_v31 }
 0x925   : > { %5406 = vmatprep.mubr.msk.f32.mxu1 %vm483_vm1, %v6386_v33 }
 0x926   : > { %v5398_v16 = vpop.f32.mrf.mxu0 }
 0x928   : > { %5407 = vmatmul.mubr.msk.f32.vlgmr.msra.gmra.mxu1 %vm483_vm1, %v6390_v34  ;;  %v3443_v17 = vpop.f32.mrf.mxu0 }
 0x929   : > { %5410 = vmatpush3.msra.mxu1 %v5373_v31  ;;  %5413 = vmatprep.mubr.msk.f32.mxu1 %vm483_vm1, %v6394_v35 }
 0x92a   : > { %5411 = vmatprep.subr.mxu1 %v3254_v32  ;;  %v5401_v18 = vpop.f32.mrf.mxu0 }
 0x92b   : > { %5412 = vmatpush3.msra.mxu1 %v3254_v32 }
 0x92c   : > { %5414 = vmatmul.mubr.msk.f32.vlgmr.msra.gmra.mxu1 %vm483_vm1, %v6398_v36  ;;  %v3453_v23 = vpop.f32.mrf.mxu0 }
 0x92d   : > { %5434 = vmatprep.mubr.msk.f32.mxu1 %vm483_vm1, %v6386_v33 }
 0x9d8   : > { %v5356_v45 = vpop.f32.mrf.mxu1 }
 0x9d9   : > { %v3095_v46 = vadd.f32 %v5356_v45, %v2821_v13 }
 0x9da   : > { %v3075_v48 = vpop.f32.mrf.mxu1 }
 0x9db   : > { %v3094_v50 = vadd.f32 %v3075_v48, %v2816_v19  ;;  %v6419_v24 = vadd.f32 %v4805_v39, %v3095_v46 }
 0x9dc   : > { %v5359_v51 = vpop.f32.mrf.mxu1 }
 0x9dd   : > { %v3097_v54 = vadd.f32 %v5359_v51, %v2831_v49  ;;  %v6421_v27 = vadd.f32 %v4805_v39, %v3094_v50 }
 0x9de   : > { %v3085_v55 = vpop.f32.mrf.mxu1 }
 0x9df   : > { %v3096_v56 = vadd.f32 %v3085_v55, %v2826_v52  ;;  %v6424_v31 = vadd.f32 %v4805_v39, %v3097_v54 }
 0x9e0   : > { %v5384_v57 = vpop.f32.mrf.mxu1 }
 0x9e1   : > { %v3449_v43 = vadd.f32 %v5398_v16, %v5384_v57  ;;  %v6427_v41 = vadd.f32 %v4805_v39, %v3096_v56  ;;  %v4271_v16 = vld [vmem:[#allocation11 + $0x48] sm:$0xff] }
 0x9e2   : > { %v3346_v58 = vpop.f32.mrf.mxu1 }
 0x9e3   : > { %v3444_v25 = vadd.f32 %v3443_v17, %v3346_v58 }
 0x9e4   : > { %v5387_v59 = vpop.f32.mrf.mxu1 }
 0x9e5   : > { %v3459_v28 = vadd.f32 %v5401_v18, %v5387_v59 }
 0x9e6   : > { %v3356_v60 = vpop.f32.mrf.mxu1 }
 0x9e7   : > { %v3454_v37 = vadd.f32 %v3453_v23, %v3356_v60 }
 0x9e8   : > { %v5408_v3 = vpop.f32.mrf.mxu1 }
 0x9e9   : > { %v3613_v4 = vmul.f32 2.0, %v5408_v3 }
 0x9ea   : > { %v3528_v7 = vpop.f32.mrf.mxu1 }
 0x9eb   : > { %v3612_v9 = vmul.f32 2.0, %v3528_v7  ;;  %v3617_v5 = vsub.f32 %v3613_v4, %v6320_v61 }
 0x9ec   : > { %v5415_v1 = vpop.f32.mrf.mxu1 }
 0x9ed   : > { %v3616_v2 = vsub.f32 %v3612_v9, %v6322_v62  ;;  %v3615_v6 = vmul.f32 2.0, %v5415_v1  ;;  %v3761_v1 = vld [vmem:[#allocation11 + $0x18] sm:$0xff] }
 0x9ee   : > { %v3603_v10 = vpop.f32.mrf.mxu1 }
 0x9ef   : > { %v3614_v12 = vmul.f32 2.0, %v3603_v10  ;;  %5424 = vmatprep.mubr.msk.f32.mxu0 %vm1284_vm4, %v3616_v2  ;;  %v3619_v20 = vsub.f32 %v3615_v6, %v6330_v63  ;;  %v3760_v2 = vld [vmem:[#allocation11 + $0x10] sm:$0xff]  ;;  %v3758_v6 = vld [vmem:[#allocation11] sm:$0xff] }
 0x9f0   : > { %5425 = vmatmul.mubr.msk.f32.vlgmr.msra.gmra.mxu0 %vm1284_vm4, %v3617_v5  ;;  %v3759_v5 = vld [vmem:[#allocation11 + $0x8] sm:$0xff]  ;;  %v3913_v10 = vld [vmem:[#allocation11 + $0x20] sm:$0xff] }
 0x9f1   : > { %v3618_v14 = vsub.f32 %v3614_v12, %v6334_v0  ;;  %5445 = vmatpush3.msra.mxu0 %v3916_v21 }
 0x9f2   : > { %5446 = vmatprep.subr.mxu0 %v3915_v15 }
 0x9f3   : > { %5427 = vmatprep.mubr.msk.f32.mxu0 %vm1284_vm4, %v3618_v14  ;;  %5447 = vmatpush3.msra.mxu0 %v3915_v15  ;;  %v4273_v15 = vld [vmem:[#allocation11 + $0x58] sm:$0xff] }
 0x9f4   : > { %5428 = vmatmul.mubr.msk.f32.gmra.mxu0 %vm1284_vm4, %v3619_v20  ;;  %5448 = vmatprep.subr.mxu0 %v3914_v22 }
 0x9f5   : > { %5449 = vmatpush3.msra.mxu0 %v3914_v22  ;;  %v4272_v22 = vld [vmem:[#allocation11 + $0x50] sm:$0xff] }
 0x9f6   : > { %5450 = vmatprep.subr.mxu0 %v3913_v10 }
 0x9f7   : > { %5451 = vmatpush3.msra.mxu0 %v3913_v10 }
 0xab0   : > { %v5426_v47 = vpop.f32.mrf.mxu0 }
 0xab1   : > { %v3723_v53 = vadd.f32 %v5426_v47, %v3449_v43 }
 0xab2   : > { %v3703_v26 = vpop.f32.mrf.mxu0 }
 0xab3   : > { %v3727_v29 = vadd.f32 %v3723_v53, %v6419_v24  ;;  %v3722_v30 = vadd.f32 %v3703_v26, %v3444_v25 }
 0xab4   : > { %v5429_v32 = vpop.f32.mrf.mxu0 }
 0xab5   : > { %v4827_v8 = vmul.f32 -1.442695, %v3727_v29  ;;  %v3726_v38 = vadd.f32 %v3722_v30, %v6421_v27  ;;  %v3725_v40 = vadd.f32 %v5429_v32, %v3459_v28 }
 0xab6   : > { %v3713_v42 = vpop.f32.mrf.mxu0 }
 0xab7   : > { %5585 = vpow2.f32 %v4827_v8  ;;  %v4826_v11 = vmul.f32 -1.442695, %v3726_v38  ;;  %v3729_v44 = vadd.f32 %v3725_v40, %v6424_v31  ;;  %v3724_v13 = vadd.f32 %v3713_v42, %v3454_v37 }
 0xab9   : > { %5587 = vpow2.f32 %v4826_v11  ;;  %v4829_v45 = vmul.f32 -1.442695, %v3729_v44  ;;  %v3728_v19 = vadd.f32 %v3724_v13, %v6427_v41 }
 0xabb   : > { %5589 = vpow2.f32 %v4829_v45  ;;  %v4828_v46 = vmul.f32 -1.442695, %v3728_v19 }
 0xabd   : > { %5591 = vpow2.f32 %v4828_v46 }
 0xac4   : > { %v5586_v48 = vpop.eup %5585 }
 0xac5   : > { %v3743_v49 = vadd.f32 1.0, %v5586_v48 }
 0xac6   : > { %v5588_v50 = vpop.eup %5587 }
 0xac7   : > { %5593 = vrcp.f32 %v3743_v49  ;;  %v3742_v51 = vadd.f32 1.0, %v5588_v50 }
 0xac8   : > { %v5590_v52 = vpop.eup %5589 }
 0xac9   : > { %5595 = vrcp.f32 %v3742_v51  ;;  %v3745_v54 = vadd.f32 1.0, %v5590_v52 }
 0xaca   : > { %v5592_v55 = vpop.eup %5591 }
 0xacb   : > { %5597 = vrcp.f32 %v3745_v54  ;;  %v3744_v56 = vadd.f32 1.0, %v5592_v55 }
 0xacd   : > { %5599 = vrcp.f32 %v3744_v56 }
 0xad4   : > { %v6431_v57 = vpop.eup %5593 }
 0xad5   : > { %v6435_v58 = vmul.f32 %v6431_v57, %v6320_v61 }
 0xad6   : > { %v6437_v59 = vpop.eup %5595 }
 0xad7   : > { %5430 = vmatprep.subr.mxu1 %v6435_v58  ;;  %v6442_v60 = vmul.f32 %v6437_v59, %v6322_v62 }
 0xad8   : > { %v6444_v3 = vpop.eup %5597  ;;  %5431 = vmatpush3.msra.mxu1 %v6435_v58 }
 0xad9   : > { %5432 = vmatprep.subr.mxu1 %v6442_v60  ;;  %v6450_v4 = vmul.f32 %v6444_v3, %v6330_v63 }
 0xada   : > { %v6452_v7 = vpop.eup %5599  ;;  %5433 = vmatpush3.msra.mxu1 %v6442_v60 }
 0xadb   : > { %5435 = vmatmul.mubr.msk.f32.vlgmr.msra.gmra.mxu1 %vm483_vm1, %v6390_v34  ;;  %5437 = vmatprep.subr.mxu1 %v6450_v4  ;;  %v6460_v9 = vmul.f32 %v6452_v7, %v6334_v0 }
 0xadc   : > { %5438 = vmatpush3.msra.mxu1 %v6450_v4  ;;  %5441 = vmatprep.mubr.msk.f32.mxu1 %vm483_vm1, %v6394_v35 }
 0xadd   : > { %5439 = vmatprep.subr.mxu1 %v6460_v9 }
 0xade   : > { %5440 = vmatpush3.msra.mxu1 %v6460_v9 }
 0xadf   : > { %5442 = vmatmul.mubr.msk.f32.vlgmr.msra.gmra.mxu1 %vm483_vm1, %v6398_v36  ;;  %5458 = vmatprep.subr.mxu1 %v3761_v1 }
 0xae0   : > { %5459 = vmatpush3.msra.mxu1 %v3761_v1  ;;  %5466 = vmatprep.mubr.msk.f32.mxu1 %vm1284_vm4, %v6442_v60  ;;  %v4464_v1 = vld [vmem:[%s6592_s12 + $0x8] sm:$0xff] }
 0xae1   : > { %5460 = vmatprep.subr.mxu1 %v3760_v2 }
 0xae2   : > { %5461 = vmatpush3.msra.mxu1 %v3760_v2  ;;  %v4463_v2 = vld [vmem:[%s6592_s12] sm:$0xff] }
 0xae3   : > { %5462 = vmatprep.subr.mxu1 %v3759_v5 }
 0xae4   : > { %5463 = vmatpush3.msra.mxu1 %v3759_v5 }
 0xae5   : > { %5464 = vmatprep.subr.mxu1 %v3758_v6 }
 0xae6   : > { %5465 = vmatpush3.msra.mxu1 %v3758_v6  ;;  %v4416_v6 = vsub.f32 1.0, %v6431_v57 }
 0xae7   : > { %5467 = vmatmul.mubr.msk.f32.vlgmr.msra.gmra.mxu1 %vm1284_vm4, %v6435_v58  ;;  %5486 = vmatprep.subr.mxu1 %v4273_v15 }
 0xae8   : > { %5469 = vmatprep.mubr.msk.f32.mxu1 %vm1284_vm4, %v6460_v9  ;;  %5487 = vmatpush3.msra.mxu1 %v4273_v15 }
 0xae9   : > { %5488 = vmatprep.subr.mxu1 %v4272_v22 }
 0xaea   : > { %5489 = vmatpush3.msra.mxu1 %v4272_v22 }
 0xaeb   : > { %5470 = vmatmul.mubr.msk.f32.gmra.mxu1 %vm1284_vm4, %v6450_v4  ;;  %5490 = vmatprep.subr.mxu1 %v4271_v16 }
 0xaec   : > { %5491 = vmatpush3.msra.mxu1 %v4271_v16 }
 0xb9b   : > { %v5436_v12 = vpop.f32.mrf.mxu1 }
 0xb9c   : > { %5472 = vmatprep.subr.mxu0 %v5436_v12 }
 0xb9d   : > { %v3828_v14 = vpop.f32.mrf.mxu1 }
 0xb9e   : > { %5452 = vmatprep.mubr.msk.f32.mxu0 %vm1284_vm4, %v3828_v14 }
 0xb9f   : > { %v5443_v20 = vpop.f32.mrf.mxu1  ;;  %5453 = vmatmul.mubr.msk.f32.vlgmr.msra.gmra.mxu0 %vm1284_vm4, %v5436_v12 }
 0xba0   : > { %5473 = vmatpush3.msra.mxu0 %v5436_v12 }
 0xba1   : > { %5474 = vmatprep.subr.mxu0 %v3828_v14  ;;  %v3903_v21 = vpop.f32.mrf.mxu1 }
 0xba2   : > { %5475 = vmatpush3.msra.mxu0 %v3828_v14  ;;  %5455 = vmatprep.mubr.msk.f32.mxu0 %vm1284_vm4, %v3903_v21 }
 0xba3   : > { %5479 = vmatprep.subr.mxu0 %v5443_v20  ;;  %5456 = vmatmul.mubr.msk.f32.gmra.mxu0 %vm1284_vm4, %v5443_v20 }
 0xba4   : > { %5476 = vmatprep.mubr.msk.f32.mxu0 %vm483_vm1, %v6386_v33  ;;  %v4270_v33 = vld [vmem:[#allocation11 + $0x40] sm:$0xff] }
 0xba5   : > { %5492 = vmatprep.subr.mxu1 %v4270_v33 }
 0xba6   : > { %5493 = vmatpush3.msra.mxu1 %v4270_v33 }
 0xba7   : > { %5477 = vmatmul.mubr.msk.f32.vlgmr.msra.gmra.mxu0 %vm483_vm1, %v6390_v34  ;;  %v5468_v37 = vpop.f32.mrf.mxu1 }
 0xba8   : > { %5480 = vmatpush3.msra.mxu0 %v5443_v20  ;;  %5483 = vmatprep.mubr.msk.f32.mxu0 %vm483_vm1, %v6394_v35 }
 0xba9   : > { %5481 = vmatprep.subr.mxu0 %v3903_v21  ;;  %v4092_v8 = vpop.f32.mrf.mxu1 }
 0xbaa   : > { %5482 = vmatpush3.msra.mxu0 %v3903_v21  ;;  %v4415_v21 = vsub.f32 1.0, %v6437_v59 }
 0xbab   : > { %5484 = vmatmul.mubr.msk.f32.vlgmr.msra.gmra.mxu0 %vm483_vm1, %v6398_v36  ;;  %v5471_v38 = vpop.f32.mrf.mxu1 }
 0xbad   : > { %v4102_v40 = vpop.f32.mrf.mxu1 }
 0xc5f   : > { %v5454_v34 = vpop.f32.mrf.mxu0 }
 0xc60   : > { %v4098_v42 = vadd.f32 %v5468_v37, %v5454_v34 }
 0xc61   : > { %v3995_v17 = vpop.f32.mrf.mxu0 }
 0xc62   : > { %v4093_v44 = vadd.f32 %v4092_v8, %v3995_v17  ;;  %v4417_v17 = vsub.f32 1.0, %v6452_v7  ;;  %v4575_v8 = vld [vmem:[%s6582_s2] sm:$0xff] }
 0xc63   : > { %v5457_v35 = vpop.f32.mrf.mxu0 }
 0xc64   : > { %v4108_v19 = vadd.f32 %v5471_v38, %v5457_v35 }
 0xc65   : > { %v4005_v18 = vpop.f32.mrf.mxu0 }
 0xc66   : > { %v4103_v49 = vadd.f32 %v4102_v40, %v4005_v18 }
 0xc67   : > { %v5478_v39 = vpop.f32.mrf.mxu0 }
 0xc68   : > { %v4262_v23 = vmul.f32 2.0, %v5478_v39 }
 0xc69   : > { %v4177_v43 = vpop.f32.mrf.mxu0 }
 0xc6a   : > { %v4261_v36 = vmul.f32 2.0, %v4177_v43  ;;  %v4266_v53 = vsub.f32 %v4262_v23, %v6435_v58  ;;  %v4418_v43 = vsub.f32 1.0, %v6444_v3 }
 0xc6b   : > { %v5485_v47 = vpop.f32.mrf.mxu0 }
 0xc6c   : > { %v4265_v25 = vsub.f32 %v4261_v36, %v6442_v60  ;;  %v4264_v26 = vmul.f32 2.0, %v5485_v47 }
 0xc6d   : > { %v4252_v28 = vpop.f32.mrf.mxu0 }
 0xc6e   : > { %v4263_v29 = vmul.f32 2.0, %v4252_v28  ;;  %5494 = vmatprep.mubr.msk.f32.mxu1 %vm1284_vm4, %v4265_v25  ;;  %v4268_v32 = vsub.f32 %v4264_v26, %v6450_v4  ;;  %v4850_v28 = vld [vmem:[%s6593_s13] ss:$0 sm:$0xff] }
 0xc6f   : > { %5495 = vmatmul.mubr.msk.f32.vlgmr.msra.gmra.mxu1 %vm1284_vm4, %v4266_v53 }
 0xc70   : > { %v4267_v30 = vsub.f32 %v4263_v29, %v6460_v9  ;;  %v4576_v29 = vld [vmem:[%s6582_s2 + $0x8] sm:$0xff] }
 0xc72   : > { %5497 = vmatprep.mubr.msk.f32.mxu1 %vm1284_vm4, %v4267_v30 }
 0xc73   : > { %5498 = vmatmul.mubr.msk.f32.gmra.mxu1 %vm1284_vm4, %v4268_v32 }
 0xd2f   : > { %v5496_v11 = vpop.f32.mrf.mxu1 }
 0xd30   : > { %v4372_v13 = vadd.f32 %v5496_v11, %v4098_v42 }
 0xd31   : > { %v4352_v45 = vpop.f32.mrf.mxu1 }
 0xd32   : > { %v4371_v46 = vadd.f32 %v4352_v45, %v4093_v44  ;;  %4381 = vrot.lane.b32.xlu1 %v4372_v13, %s5751_s17 }
 0xd33   : > { %v5499_v48 = vpop.f32.mrf.mxu1 }
 0xd34   : > { %v4374_v50 = vadd.f32 %v5499_v48, %v4108_v19  ;;  %4379 = vrot.lane.b32.xlu0 %v4371_v46, %s5751_s17  ;;  %v4578_v46 = vld [vmem:[%s6582_s2 + $0x18] sm:$0xff] }
 0xd35   : > { %v4362_v51 = vpop.f32.mrf.mxu1 }
 0xd36   : > { %v4373_v52 = vadd.f32 %v4362_v51, %v4103_v49  ;;  %4385 = vrot.lane.b32.xlu1 %v4374_v50, %s5751_s17  ;;  %v4577_v50 = vld [vmem:[%s6582_s2 + $0x10] sm:$0xff] }
 0xd38   : > { %4383 = vrot.lane.b32.xlu0 %v4373_v52, %s5751_s17 }
 0xd3c   : > { %4399 = vrot.lane.b32.xlu0 %v6322_v62, %s5752_s20 }
 0xd40   : > { %4401 = vrot.lane.b32.xlu0 %v6320_v61, %s5752_s20 }
 0xd44   : > { %4403 = vrot.lane.b32.xlu0 %v6334_v0, %s5752_s20 }
 0xd48   : > { %4405 = vrot.lane.b32.xlu0 %v6330_v63, %s5752_s20 }
 0xda4   : > { %v4382_v54 = vpop.permute.xlu1 %4381 }
 0xda5   : > { %v4392_v55 = vadd.f32 %v4382_v54, %v6419_v24  ;;  %v4466_v24 = vld [vmem:[%s6592_s12 + $0x18] sm:$0xff] }
 0xda6   : > { %v4380_v56 = vpop.permute.xlu0 %4379  ;;  %5500 = vmatprep.subr.mxu0 %v4466_v24 }
 0xda7   : > { %5601 = vtanh.f32 %v4392_v55  ;;  %v4391_v58 = vadd.f32 %v4380_v56, %v6421_v27  ;;  %v4465_v27 = vld [vmem:[%s6592_s12 + $0x10] sm:$0xff]  ;;  %5501 = vmatpush3.msra.mxu0 %v4466_v24 }
 0xda8   : > { %v4386_v4 = vpop.permute.xlu1 %4385  ;;  %5502 = vmatprep.subr.mxu0 %v4465_v27 }
 0xda9   : > { %5603 = vtanh.f32 %v4391_v58  ;;  %v4394_v61 = vadd.f32 %v4386_v4, %v6424_v31  ;;  %5503 = vmatpush3.msra.mxu0 %v4465_v27 }
 0xdaa   : > { %v4384_v60 = vpop.permute.xlu0 %4383  ;;  %5504 = vmatprep.subr.mxu0 %v4464_v1 }
 0xdab   : > { %v4393_v62 = vadd.f32 %v4384_v60, %v6427_v41  ;;  %5505 = vmatpush3.msra.mxu0 %v4464_v1 }
 0xdac   : > { %5506 = vmatprep.subr.mxu0 %v4463_v2 }
 0xdad   : > { %5605 = vtanh.f32 %v4393_v62  ;;  %5507 = vmatpush3.msra.mxu0 %v4463_v2 }
 0xdae   : > { %5607 = vtanh.f32 %v4394_v61  ;;  %v4400_v9 = vpop.permute.xlu0 %4399 }
 0xdaf   : > { %v4411_v16 = vmul.f32 %v6437_v59, %v4400_v9 }
 0xdb2   : > { %v4402_v5 = vpop.permute.xlu0 %4401 }
 0xdb3   : > { %v4412_v12 = vmul.f32 %v6431_v57, %v4402_v5 }
 0xdb4   : > { %v5602_v0 = vpop.eup %5601 }
 0xdb5   : > { %4425 = vrot.lane.b32.xlu1 %v5602_v0, %s5753_s21 }
 0xdb6   : > { %v5604_v63 = vpop.eup %5603  ;;  %v4404_v15 = vpop.permute.xlu0 %4403 }
 0xdb7   : > { %v4413_v18 = vmul.f32 %v6452_v7, %v4404_v15 }
 0xdb9   : > { %4423 = vrot.lane.b32.xlu1 %v5604_v63, %s5753_s21 }
 0xdba   : > { %v5606_v31 = vpop.eup %5605  ;;  %v4406_v57 = vpop.permute.xlu0 %4405 }
 0xdbb   : > { %v5608_v41 = vpop.eup %5607  ;;  %v4414_v47 = vmul.f32 %v6444_v3, %v4406_v57 }
 0xdbd   : > { %4427 = vrot.lane.b32.xlu1 %v5606_v31, %s5753_s21 }
 0xdc1   : > { %4429 = vrot.lane.b32.xlu1 %v5608_v41, %s5753_s21 }
 0xe27   : > { %v4426_v10 = vpop.permute.xlu1 %4425 }
 0xe28   : > { %v4436_v14 = vmul.f32 %v4426_v10, %v4416_v6 }
 0xe2a   : > { %v4440_v20 = vadd.f32 %v4436_v14, %v4412_v12 }
 0xe2b   : > { %v4424_v22 = vpop.permute.xlu1 %4423 }
 0xe2c   : > { %v4435_v33 = vmul.f32 %v4424_v22, %v4415_v21  ;;  %4449 = vrot.lane.b32.xlu1 %v4440_v20, %s5753_s21 }
 0xe2e   : > { %v4439_v34 = vadd.f32 %v4435_v33, %v4411_v16 }
 0xe2f   : > { %v4428_v35 = vpop.permute.xlu1 %4427 }
 0xe30   : > { %v4437_v39 = vmul.f32 %v4428_v35, %v4417_v17  ;;  %4447 = vrot.lane.b32.xlu0 %v4439_v34, %s5753_s21 }
 0xe32   : > { %v4441_v23 = vadd.f32 %v4437_v39, %v4413_v18 }
 0xe33   : > { %v4430_v36 = vpop.permute.xlu1 %4429 }
 0xe34   : > { %v4438_v59 = vmul.f32 %v4430_v36, %v4418_v43  ;;  %4451 = vrot.lane.b32.xlu0 %v4441_v23, %s5753_s21 }
 0xe36   : > { %v4442_v25 = vadd.f32 %v4438_v59, %v4414_v47 }
 0xe38   : > { %4453 = vrot.lane.b32.xlu1 %v4442_v25, %s5753_s21  ;;  %s4571_s21 = sld [smem:[#allocation6 + %s5838_s0]] }
 0xe3e   : > { %p4572_p3 = scmp.gt.s32.totalorder %s4571_s21, 0 }
 0xe40   : > { %s4573_s16 = scalar_select %p4572_p3, 1, 0 }
 0xe42   : > { %s4574_s22 = scvt.s32.f32 %s4573_s16 }
 0xe44   : > { %s4584_s25 = ssub.f32 1.0, %s4574_s22  ;;  %v4579_v30 = vstv %s4574_s22 }
 0xe45   : > { %v4581_v40 = vmul.f32 %v4579_v30, %v4576_v29  ;;  %v4580_v13 = vmul.f32 %v4579_v30, %v4575_v8  ;;  %v4583_v52 = vmul.f32 %v4579_v30, %v4578_v46  ;;  %v4582_v58 = vmul.f32 %v4579_v30, %v4577_v50 }
 0xe46   : > { %v4585_v37 = vstv %s4584_s25 }
 0xe9e   : > { %v4450_v53 = vpop.permute.xlu1 %4449 }
 0xe9f   : > { %4460 = vst.msk [vmem:[#allocation2 + $0x28] sm:$0xff] %vm1284_vm4, %v4450_v53 }
 0xea2   : > { %v4448_v7 = vpop.permute.xlu0 %4447 }
 0xea3   : > { %4459 = vst.msk [vmem:[#allocation2 + $0x20] sm:$0xff] %vm1284_vm4, %v4448_v7  ;;  %5508 = vmatprep.mubr.msk.f32.mxu0 %vm1284_vm4, %v4448_v7 }
 0xea4   : > { %5509 = vmatmul.mubr.msk.f32.vlgmr.msra.gmra.mxu0 %vm1284_vm4, %v4450_v53 }
 0xea6   : > { %v4452_v26 = vpop.permute.xlu0 %4451 }
 0xea7   : > { %4461 = vst.msk [vmem:[#allocation2 + $0x30] sm:$0xff] %vm1284_vm4, %v4452_v26  ;;  %5511 = vmatprep.mubr.msk.f32.mxu0 %vm1284_vm4, %v4452_v26 }
 0xeaa   : > { %v4454_v3 = vpop.permute.xlu1 %4453 }
 0xeab   : > { %4462 = vst.msk [vmem:[#allocation2 + $0x38] sm:$0xff] %vm1284_vm4, %v4454_v3  ;;  %5512 = vmatmul.mubr.msk.f32.gmra.mxu0 %vm1284_vm4, %v4454_v3 }
 0xf64   : > { %v5510_v32 = vpop.f32.mrf.mxu0 }
 0xf65   : > { %v4554_v38 = vadd.f32 %v5510_v32, %v4850_v28 }
 0xf66   : > { %v4548_v42 = vpop.f32.mrf.mxu0 }
 0xf67   : > { %4568 = vst.msk [vmem:[%s5904_s27 + $0x8] sm:$0xff] %vm648_vm3, %v4554_v38  ;;  %v4587_v11 = vmul.f32 %v4585_v37, %v4554_v38  ;;  %v4549_v44 = vadd.f32 %v4850_v28, %v4548_v42 }
 0xf69   : > { %v4591_v45 = vadd.f32 %v4587_v11, %v4581_v40  ;;  %4567 = vst.msk [vmem:[%s5904_s27] sm:$0xff] %vm648_vm3, %v4549_v44  ;;  %v4586_v19 = vmul.f32 %v4585_v37, %v4549_v44 }
 0xf6b   : > { %4595 = vst.msk [vmem:[#allocation3 + $0x8] sm:$0xff] %vm648_vm3, %v4591_v45  ;;  %v4590_v48 = vadd.f32 %v4586_v19, %v4580_v13  ;;  %v5513_v49 = vpop.f32.mrf.mxu0 }
 0xf6c   : > { %v4564_v51 = vadd.f32 %v5513_v49, %v4850_v28 }
 0xf6d   : > { %4594 = vst.msk [vmem:[#allocation3] sm:$0xff] %vm648_vm3, %v4590_v48  ;;  %v4558_v54 = vpop.f32.mrf.mxu0 }
 0xf6e   : > { %4570 = vst.msk [vmem:[%s5904_s27 + $0x18] sm:$0xff] %vm648_vm3, %v4564_v51  ;;  %v4589_v55 = vmul.f32 %v4585_v37, %v4564_v51  ;;  %v4559_v56 = vadd.f32 %v4850_v28, %v4558_v54 }
 0xf70   : > { %v4593_v60 = vadd.f32 %v4589_v55, %v4583_v52  ;;  %4569 = vst.msk [vmem:[%s5904_s27 + $0x10] sm:$0xff] %vm648_vm3, %v4559_v56  ;;  %v4588_v62 = vmul.f32 %v4585_v37, %v4559_v56 }
 0xf72   : > { %4597 = vst.msk [vmem:[#allocation3 + $0x18] sm:$0xff] %vm648_vm3, %v4593_v60  ;;  %v4592_v4 = vadd.f32 %v4588_v62, %v4582_v58 }
 0xf74   : > { %4596 = vst.msk [vmem:[#allocation3 + $0x10] sm:$0xff] %vm648_vm3, %v4592_v4 }
 0xf75 PF: > { %s32_s18 = sadd.s32 1, %s5741_s18  }
 0xf76   : > { %p29_p4 = scmp.ge.s32.totalorder %s32_s18, 10  }
 0xf78   :  { %31 = sbr.rel (!%p29_p4) target bundleno = 17 (0x11), region = 129 }
 0xf7d   :  { %4619 = vsyncpa [#allocation8], 1 }
 0xf7e   :  { %4621 = vsyncpa [#allocation8 + $0x1], 1 }
 0xf7f   :  { %4622 = vsyncpa [#allocation10], 1 }
 0xf80   :  { %4623 = vsyncmov [#allocation4] }
 0xf83   :  { %s4624_s15 = vpop.sfrf %4623 }
 0xf84   :  { %p4857_p5 = scmp.ne.s32.totalorder %s4624_s15, 0 }
 0xf86   :  { %4628 = shalt.err (%p4857_p5)  }

</bundles_post_ra>
